<compile_context>
chip_gen: v6e
topology: v6e:2x2x1
jax: 0.10.0
libtpu: 0.0.40
codegen_flags: <defaults>
</compile_context>

<pallas_src>
import numpy as np
import jax
import jax.numpy as jnp
from jax.experimental import pallas as pl
from jax.experimental.pallas import tpu as pltpu


def temporal_block_kernel(x_ref, w_ref, o_ref):
    f32 = jnp.float32
    x = x_ref[...]                                   # (TB, H, L), compute dtype (bf16 default)
    cdt = x.dtype
    tb, H, L = x.shape

    # Fused q|k|v projection: one MXU matmul with a tall (TB*H) LHS (H multiple of 8 ->
    # the reshape is a free sublane relabel).
    qkv = jnp.dot(x.reshape(tb * H, L), w_ref[...],
                  preferred_element_type=f32)        # (TB*H, 3L), f32 accumulation
    # Cast the projections back to the MXU-native compute dtype so the attention matmuls
    # also get bf16 operands (feedback: propagate bf16 past the projection).
    qx = qkv[:, 0 * L:1 * L].reshape(tb, H, L).astype(cdt)
    kx = qkv[:, 1 * L:2 * L].reshape(tb, H, L).astype(cdt)
    vx = qkv[:, 2 * L:3 * L].reshape(tb, H, L).astype(cdt)

    # qk = qx @ kx^T per batch element (contract the temporal axis).
    qk = jnp.einsum('bhi,bji->bhj', qx, kx,
                    preferred_element_type=f32)      # (TB, H, H)

    # softmax over the last axis; the divide goes to the EUP via approx reciprocal.
    qk = qk - jnp.max(qk, axis=-1, keepdims=True)
    e = jnp.exp(qk)
    a = e * pl.reciprocal(jnp.sum(e, axis=-1, keepdims=True), approx=True)

    # y = a @ vx (bf16 operands, f32 accumulation).
    y = jnp.einsum('bhj,bji->bhi', a.astype(cdt), vx,
                   preferred_element_type=f32)       # (TB, H, L)
    o_ref[...] = y.astype(o_ref.dtype)


def _tpu_params():
    """Per-generation (num_tensorcores, vmem_budget_bytes, vmem_limit_bytes, mxu_rows)."""
    try:
        kind = jax.devices()[0].device_kind.lower()
    except Exception:
        kind = ""
    if "v7" in kind:                       # 2 TC / 64 MiB physical VMEM / 256-row MXU
        return 2, 16 << 20, 32 << 20, 256
    if "v6" in kind:                       # 1 TC / 128 MiB VMEM / 256-row MXU
        return 1, 32 << 20, 64 << 20, 256
    if "v5" in kind:                       # v5e: 1 TC / 128 MiB VMEM / 128-row MXU
        return 1, 16 << 20, 32 << 20, 128
    # Unknown generation: conservative defaults, don't override the scoped VMEM limit.
    return 1, 12 << 20, None, 128


def _pick_block_b(B, H, L, *, elt_bytes, vmem_budget_bytes, num_cores, mxu_rows):
    """Largest batch-block that divides B, fits the VMEM budget (counting the 2x
    double-buffering of the pipelined x/out blocks and the resident fused weight),
    and — only on multi-TensorCore chips — keeps the step count core-balanced."""
    per_b = (2 * H * L * elt_bytes          # x block, double-buffered by the pipeline
             + 2 * H * L * 4                # out block (f32), double-buffered
             + H * 3 * L * 4                # fused qkv projection result (f32)
             + 3 * H * L * elt_bytes        # qx/kx/vx in compute dtype
             + H * H * 4                    # qk / softmax scratch
             + H * L * 4)                   # y accumulator (f32)
    resident = 2 * L * (3 * L) * elt_bytes  # fused weight (worst case: double-buffered)
    budget = max(vmem_budget_bytes - resident, per_b)

    divisors = [d for d in range(1, B + 1) if B % d == 0]
    feasible = [d for d in divisors if d * per_b <= budget] or [1]

    if num_cores >= 2 and B >= num_cores:
        balanced = [d for d in feasible if (B // d) % num_cores == 0]
        if balanced:
            feasible = balanced

    # Largest feasible block: fewest grid steps and best MXU row fill (TB*H vs mxu_rows).
    del mxu_rows  # max(feasible) already maximizes row fill
    return max(feasible)


def temporal_block(x, w_q, w_k, w_v, *, block_b=None,
                   compute_dtype=jnp.bfloat16, out_dtype=jnp.float32):
    """x: (B, H, L); w_q/w_k/w_v: (3, L, L) as in the module."""
    B, H, L = x.shape
    # Fold the summed-out 'p' axis once and fuse the three projections: (L, 3L).
    W = jnp.concatenate([jnp.sum(w_q, axis=0),
                         jnp.sum(w_k, axis=0),
                         jnp.sum(w_v, axis=0)], axis=1).astype(compute_dtype)
    xin = x.astype(compute_dtype)

    num_cores, vmem_budget, vmem_limit, mxu_rows = _tpu_params()

    if block_b is None:
        block_b = _pick_block_b(B, H, L,
                                elt_bytes=jnp.dtype(compute_dtype).itemsize,
                                vmem_budget_bytes=vmem_budget,
                                num_cores=num_cores, mxu_rows=mxu_rows)
    assert B % block_b == 0
    grid = (B // block_b,)

    # TODO(synk): if production H is not a multiple of the sublane pack (8 f32 / 16 bf16),
    # pad H in the wrapper and mask the padded key columns to -inf before the softmax.

    cp_kwargs = dict(dimension_semantics=("parallel",))
    if vmem_limit is not None:
        cp_kwargs["vmem_limit_bytes"] = vmem_limit

    return pl.pallas_call(
        temporal_block_kernel,
        out_shape=jax.ShapeDtypeStruct((B, H, L), out_dtype),
        grid_spec=pltpu.PrefetchScalarGridSpec(
            num_scalar_prefetch=0,
            grid=grid,
            in_specs=[
                pl.BlockSpec((block_b, H, L), lambda i: (i, 0, 0)),
                pl.BlockSpec((L, 3 * L), lambda i: (0, 0)),   # invariant weight stays resident
            ],
            out_specs=pl.BlockSpec((block_b, H, L), lambda i: (i, 0, 0)),
        ),
        compiler_params=pltpu.CompilerParams(**cp_kwargs),
    )(xin, W)


def temporal_block_ref(x, w_q, w_k, w_v):
    """Pure-JAX (f32) reference of the PyTorch forward."""
    Wq = jnp.sum(w_q, axis=0)
    Wk = jnp.sum(w_k, axis=0)
    Wv = jnp.sum(w_v, axis=0)
    qx = x @ Wq
    kx = x @ Wk
    vx = x @ Wv
    qk = jnp.einsum('bhi,bji->bhj', qx, kx)          # qx @ kx.transpose(1, 2)
    a = jax.nn.softmax(qk, axis=-1)
    return jnp.einsum('bhj,bji->bhi', a, vx)


if __name__ == "__main__":
    key = jax.random.PRNGKey(0)
    kx_, kq_, kk_, kv_ = jax.random.split(key, 4)

    B, H, L = 4, 64, 128                              # batch, channels, tem_len
    x = jax.random.normal(kx_, (B, H, L), dtype=jnp.float32)
    # Module init is scale*ones (degenerate); use random weights of a sane magnitude so
    # the softmax / attention path is actually exercised.
    w_q = (1.0 / L) * jax.random.normal(kq_, (3, L, L), dtype=jnp.float32)
    w_k = (1.0 / L) * jax.random.normal(kk_, (3, L, L), dtype=jnp.float32)
    w_v = (1.0 / L) * jax.random.normal(kv_, (3, L, L), dtype=jnp.float32)

    out = jax.block_until_ready(temporal_block(x, w_q, w_k, w_v))
    ref = jax.block_until_ready(temporal_block_ref(x, w_q, w_k, w_v))

    ref_np = np.asarray(ref)
    # bf16 MXU operands + approx reciprocal -> bf16-level tolerance vs the f32 reference.
    tol = 2e-2 * float(np.max(np.abs(ref_np))) + 1e-6
    np.testing.assert_allclose(np.asarray(out), ref_np, rtol=5e-2, atol=tol)
    print("KERNEL_OK")
</pallas_src>

<mosaic_0001>
module attributes {stable_mosaic.version = 11 : i64} {
  func.func @temporal_block_kernel(%arg0: i32, %arg1: memref<4x64x128xbf16, #tpu.memory_space<vmem>>, %arg2: memref<128x384xbf16, #tpu.memory_space<vmem>>, %arg3: memref<4x64x128xf32, #tpu.memory_space<vmem>>) attributes {dimension_semantics = [#tpu.dimension_semantics<parallel>], iteration_bounds = array<i64: 1>, scalar_prefetch = 0 : i64, scratch_operands = 0 : i64, tpu.core_type = #tpu.core_type<tc>, window_params = [{transform_indices = @transform_0, window_bounds = array<i64: 4, 64, 128>}, {pipeline_mode = #tpu.pipeline_mode<synchronous>, transform_indices = @transform_1, window_bounds = array<i64: 128, 384>}, {transform_indices = @transform_2, window_bounds = array<i64: 4, 64, 128>}]} {
    %c0 = arith.constant 0 : index
    %c0_0 = arith.constant 0 : index
    %c0_1 = arith.constant 0 : index
    %0 = vector.load %arg1[%c0, %c0_0, %c0_1] : memref<4x64x128xbf16, #tpu.memory_space<vmem>>, vector<4x64x128xbf16>
    %1 = vector.shape_cast %0 : vector<4x64x128xbf16> to vector<256x128xbf16>
    %c0_2 = arith.constant 0 : index
    %c0_3 = arith.constant 0 : index
    %2 = vector.load %arg2[%c0_2, %c0_3] : memref<128x384xbf16, #tpu.memory_space<vmem>>, vector<128x384xbf16>
    %cst = arith.constant dense<0.000000e+00> : vector<256x384xf32>
    %3 = tpu.matmul %1, %2, %cst {dimension_numbers = #tpu.dot_dimension_numbers<[1], [0], [0], [1], [0, 0, 1, 1], [], []>} : vector<256x128xbf16>, vector<128x384xbf16>, vector<256x384xf32> -> vector<256x384xf32>
    %4 = vector.extract_strided_slice %3 {offsets = [0, 0], sizes = [256, 128], strides = [1, 1]} : vector<256x384xf32> to vector<256x128xf32>
    %5 = vector.shape_cast %4 : vector<256x128xf32> to vector<4x64x128xf32>
    %6 = arith.truncf %5 : vector<4x64x128xf32> to vector<4x64x128xbf16>
    %7 = vector.extract_strided_slice %3 {offsets = [0, 128], sizes = [256, 128], strides = [1, 1]} : vector<256x384xf32> to vector<256x128xf32>
    %8 = vector.shape_cast %7 : vector<256x128xf32> to vector<4x64x128xf32>
    %9 = arith.truncf %8 : vector<4x64x128xf32> to vector<4x64x128xbf16>
    %10 = vector.extract_strided_slice %3 {offsets = [0, 256], sizes = [256, 128], strides = [1, 1]} : vector<256x384xf32> to vector<256x128xf32>
    %11 = vector.shape_cast %10 : vector<256x128xf32> to vector<4x64x128xf32>
    %12 = arith.truncf %11 : vector<4x64x128xf32> to vector<4x64x128xbf16>
    "tpu.trace_start"() <{level = 10 : i32, message = "bhi,bji->bhj"}> : () -> ()
    %cst_4 = arith.constant dense<0.000000e+00> : vector<4x64x64xf32>
    %13 = tpu.matmul %6, %9, %cst_4 {dimension_numbers = #tpu.dot_dimension_numbers<[2], [2], [1], [1], [0, 0, 0, 1, 1, 1], [0], [0]>} : vector<4x64x128xbf16>, vector<4x64x128xbf16>, vector<4x64x64xf32> -> vector<4x64x64xf32>
    "tpu.trace_stop"() : () -> ()
    %cst_5 = arith.constant dense<0xFF800000> : vector<4x64xf32>
    %14 = vector.multi_reduction <maximumf>, %13, %cst_5 [2] : vector<4x64x64xf32> to vector<4x64xf32>
    %15 = vector.shape_cast %14 : vector<4x64xf32> to vector<4x64x1xf32>
    %16 = vector.broadcast %15 : vector<4x64x1xf32> to vector<4x64x64xf32>
    %17 = arith.subf %13, %16 : vector<4x64x64xf32>
    %18 = math.exp %17 : vector<4x64x64xf32>
    %cst_6 = arith.constant dense<0.000000e+00> : vector<4x64xf32>
    %19 = vector.multi_reduction <add>, %18, %cst_6 [2] : vector<4x64x64xf32> to vector<4x64xf32>
    %20 = vector.shape_cast %19 : vector<4x64xf32> to vector<4x64x1xf32>
    %21 = tpu.reciprocal %20 {approx = true} : vector<4x64x1xf32> -> vector<4x64x1xf32>
    %22 = vector.broadcast %21 : vector<4x64x1xf32> to vector<4x64x64xf32>
    %23 = arith.mulf %18, %22 : vector<4x64x64xf32>
    %24 = arith.truncf %23 : vector<4x64x64xf32> to vector<4x64x64xbf16>
    "tpu.trace_start"() <{level = 10 : i32, message = "bhj,bji->bhi"}> : () -> ()
    %cst_7 = arith.constant dense<0.000000e+00> : vector<4x64x128xf32>
    %25 = tpu.matmul %24, %12, %cst_7 {dimension_numbers = #tpu.dot_dimension_numbers<[2], [1], [1], [2], [0, 0, 0, 1, 1, 2], [0], [0]>} : vector<4x64x64xbf16>, vector<4x64x128xbf16>, vector<4x64x128xf32> -> vector<4x64x128xf32>
    "tpu.trace_stop"() : () -> ()
    %c0_8 = arith.constant 0 : index
    %c0_9 = arith.constant 0 : index
    %c0_10 = arith.constant 0 : index
    %26 = vector.load %arg3[%c0_8, %c0_9, %c0_10] : memref<4x64x128xf32, #tpu.memory_space<vmem>>, vector<4x64x128xf32>
    tpu.vector_store %arg3[%c0_8, %c0_9, %c0_10], %25 {strides = array<i32>} : memref<4x64x128xf32, #tpu.memory_space<vmem>>, vector<4x64x128xf32>,
    return
  }
  func.func @transform_0(%arg0: i32) -> (i32, i32, i32) {
    %c0_i32 = arith.constant 0 : i32
    %c0_i32_0 = arith.constant 0 : i32
    %c0_i32_1 = arith.constant 0 : i32
    return %arg0, %c0_i32, %c0_i32_0 : i32, i32, i32
  }
  func.func @transform_1(%arg0: i32) -> (i32, i32) {
    %c0_i32 = arith.constant 0 : i32
    %c0_i32_0 = arith.constant 0 : i32
    %c0_i32_1 = arith.constant 0 : i32
    return %c0_i32, %c0_i32_0 : i32, i32
  }
  func.func @transform_2(%arg0: i32) -> (i32, i32, i32) {
    %c0_i32 = arith.constant 0 : i32
    %c0_i32_0 = arith.constant 0 : i32
    %c0_i32_1 = arith.constant 0 : i32
    return %arg0, %c0_i32, %c0_i32_0 : i32, i32, i32
  }
}

</mosaic_0001>

<bundles_post_ra>
// kernel: tpu_custom_call.1
= control target key start
LH: loop header
LB: loop body
LE: loop exit
PB: predicated region body
PF: predicated region fallthrough
CT: control target
= control target key end

     0   :  { %7 = vsyncpa [#allocation3], 0  ;;  %s2815_s0 = inlined_call_operand.hbm [shape: bf16[4,64,128], index: 0, kind: input, shape index: {}]   ;;  %s2816_s1 = inlined_call_operand.hbm [shape: bf16[128,384], index: 1, kind: input, shape index: {}]   ;;  %s2817_s2 = inlined_call_operand.hbm [shape: f32[4,64,128], index: 2, kind: output, shape index: {}]  }
   0x1   :  { %8 = vsyncpa [#allocation6], 0 }
   0x2   :  { %9 = vsyncpa [#allocation4], 0  ;;  %s2290_s9 = smov [#allocation2]  }
   0x3   :  { %s15_s10 = sshll.u32 %s2290_s9, 4  ;;  %s16_s10 = int_to_ptr.vmem [resolvable:$true] %s15_s10 }
   0x4   :  { %s2232_s11 = scalar_lea.vmem %s16_s10, 2048  ;;  %p2237_p1 = scmp.lt.s32.totalorder %s16_s10, %s16_s10 }
   0x5   :  { %p2233_p0 = scmp.ne.s32.totalorder %s16_s10, %s2232_s11  ;;  %p2238_p2 = scmp.lt.s32.totalorder %s2232_s11, %s2232_s11 }
   0x7   :  { %p2239_p3 = por %p2238_p2, %p2237_p1 }
   0x9   :  { %p2240_p4 = pnand %p2239_p3, %p2233_p0 }
   0xb   :  { %2243 = shalt.err (!%p2240_p4)
}
   0xc   :  { %s2291_s12 = smov 64   ;;  %s2292_s13 = smov 4  }
   0xd   :  { %21 = dma.hbm_to_vmem [thread:$0]  %s2815_s0, 2048, %s16_s10, [#allocation3], %s2291_s12, %s2291_s12, %s2292_s13  }
   0xe   :  { %s2293_s16 = smov [#allocation5]  }
   0xf   :  { %s27_s17 = sshll.u32 %s2293_s16, 4  ;;  %s28_s17 = int_to_ptr.vmem [resolvable:$true] %s27_s17 }
  0x10   :  { %s2252_s18 = scalar_lea.vmem %s28_s17, 3072  ;;  %p2257_p6 = scmp.lt.s32.totalorder %s28_s17, %s28_s17 }
  0x11   :  { %p2253_p5 = scmp.ne.s32.totalorder %s28_s17, %s2252_s18  ;;  %p2258_p7 = scmp.lt.s32.totalorder %s2252_s18, %s2252_s18 }
  0x13   :  { %p2259_p8 = por %p2258_p7, %p2257_p6 }
  0x15   :  { %p2260_p9 = pnand %p2259_p8, %p2253_p5 }
  0x17   :  { %2263 = shalt.err (!%p2260_p9)
}
  0x18   :  { %s2294_s19 = smov 192   ;;  %s2295_s20 = smov 12  }
  0x19   :  { %33 = dma.hbm_to_vmem [thread:$0]  %s2816_s1, 3072, %s28_s17, [#allocation6], %s2294_s19, %s2294_s19, %s2295_s20  }
  0x1a   :  { %2284 = dma.done.wait [#allocation3], 2048  }
  0x1b   :  { %2285 = vsyncadd [#allocation3], 4294965248 }
  0x1c   :  { %2286 = dma.done.wait [#allocation6], 3072  }
  0x1d   :  { %2287 = vsyncadd [#allocation6], 4294964224  ;;  %v2296_v0 = vmov 0   ;;  %v2048_v1 = vld [vmem:[#allocation5 + $0xac] ss:$12 sps:$4 sm:$0xff]   ;;  %v2072_v9 = vld [vmem:[#allocation2] sm:$0xff]  }
  0x1e   :  { %361 = vmatprep.mubr.bf16.mxu0 %v2296_v0  ;;  %v2050_v2 = vld [vmem:[#allocation5 + $0xa8] ss:$12 sps:$4 sm:$0xff]   ;;  %329 = vmatprep.subr.bf16.mxu0 %v2048_v1  ;;  %v2053_v4 = vld [vmem:[#allocation5 + $0x90] ss:$12 sps:$4 sm:$0xff]   ;;  %v2056_v6 = vld [vmem:[#allocation5 + $0x78] ss:$12 sps:$4 sm:$0xff]  }
  0x1f   :  { %v2051_v3 = vld [vmem:[#allocation5 + $0x94] ss:$12 sps:$4 sm:$0xff]   ;;  %330 = vmatpush1.bf16.msra.mxu0 %v2050_v2  ;;  %v2054_v5 = vld [vmem:[#allocation5 + $0x7c] ss:$12 sps:$4 sm:$0xff]   ;;  %v2057_v7 = vld [vmem:[#allocation5 + $0x64] ss:$12 sps:$4 sm:$0xff]   ;;  %1878 = vmatprep.mubr.bf16.mxu1 %v2072_v9 }
  0x20   :  { %331 = vmatprep.subr.bf16.mxu0 %v2051_v3  ;;  %v2059_v8 = vld [vmem:[#allocation5 + $0x60] ss:$12 sps:$4 sm:$0xff]   ;;  %v2062_v11 = vld [vmem:[#allocation5 + $0x48] ss:$12 sps:$4 sm:$0xff]   ;;  %v2065_v13 = vld [vmem:[#allocation5 + $0x30] ss:$12 sps:$4 sm:$0xff]  }
  0x21   :  { %v2060_v10 = vld [vmem:[#allocation5 + $0x4c] ss:$12 sps:$4 sm:$0xff]   ;;  %v2063_v12 = vld [vmem:[#allocation5 + $0x34] ss:$12 sps:$4 sm:$0xff]   ;;  %v2066_v14 = vld [vmem:[#allocation5 + $0x1c] ss:$12 sps:$4 sm:$0xff]  }
  0x22   :  { %v2068_v15 = vld [vmem:[#allocation5 + $0x18] ss:$12 sps:$4 sm:$0xff]   ;;  %v2086_v17 = vld [vmem:[#allocation5 + $0xb0] ss:$12 sps:$4 sm:$0xff]   ;;  %v2071_v18 = vld [vmem:[#allocation5] ss:$12 sps:$4 sm:$0xff]  }
  0x23   :  { %332 = vmatpush1.bf16.msra.mxu0 %v2053_v4  ;;  %v2069_v16 = vld [vmem:[#allocation5 + $0x4] ss:$12 sps:$4 sm:$0xff]   ;;  %1862 = vmatprep.subr.bf16.mxu1 %v2086_v17  ;;  %v2089_v20 = vld [vmem:[#allocation5 + $0x80] ss:$12 sps:$4 sm:$0xff]   ;;  %v2091_v21 = vld [vmem:[#allocation5 + $0x68] ss:$12 sps:$4 sm:$0xff]  }
  0x24   :  { %333 = vmatprep.subr.bf16.mxu0 %v2054_v5  ;;  %v2088_v19 = vld [vmem:[#allocation5 + $0x98] ss:$12 sps:$4 sm:$0xff]   ;;  %1863 = vmatpush3.bf16.msra.mxu1 %v2086_v17  ;;  %v2092_v22 = vld [vmem:[#allocation5 + $0x50] ss:$12 sps:$4 sm:$0xff]   ;;  %v2073_v23 = vld [vmem:[#allocation2 + $0x8] sm:$0xff]   ;;  %vm991_vm0 = vcmask 523264  }
  0x25   :  { %1864 = vmatprep.subr.bf16.mxu1 %v2088_v19  ;;  %v2093_v24 = vld [vmem:[#allocation5 + $0x38] ss:$12 sps:$4 sm:$0xff]   ;;  %v2094_v25 = vld [vmem:[#allocation5 + $0x20] ss:$12 sps:$4 sm:$0xff]   ;;  %v2074_v26 = vld [vmem:[#allocation2 + $0x10] sm:$0xff]   ;;  %s2297_s0 = smov [#allocation7]  }
  0x26   :  { %v2095_v27 = vld [vmem:[#allocation5 + $0x8] ss:$12 sps:$4 sm:$0xff]   ;;  %v2075_v28 = vld [vmem:[#allocation2 + $0x18] sm:$0xff]   ;;  %v2076_v29 = vld [vmem:[#allocation2 + $0x20] sm:$0xff]   ;;  %s1705_s1 = sshll.u32 %s2297_s0, 4  ;;  %s1706_s1 = int_to_ptr.vmem [resolvable:$true] %s1705_s1 }
  0x27   :  { %334 = vmatpush1.bf16.msra.mxu0 %v2056_v6  ;;  %v2077_v30 = vld [vmem:[#allocation2 + $0x28] sm:$0xff]   ;;  %v2078_v31 = vld [vmem:[#allocation2 + $0x30] sm:$0xff]   ;;  %v2079_v32 = vld [vmem:[#allocation2 + $0x38] sm:$0xff]   ;;  %s2264_s23 = scalar_lea.vmem %s1706_s1, 4096  ;;  %p2269_p11 = scmp.lt.s32.totalorder %s1706_s1, %s1706_s1 }
  0x28   :  { %335 = vmatprep.subr.bf16.mxu0 %v2057_v7  ;;  %1865 = vmatpush3.bf16.msra.mxu1 %v2088_v19  ;;  %v2080_v33 = vld [vmem:[#allocation2 + $0x40] sm:$0xff]   ;;  %v2081_v34 = vld [vmem:[#allocation2 + $0x48] sm:$0xff]   ;;  %v2082_v35 = vld [vmem:[#allocation2 + $0x50] sm:$0xff]   ;;  %p2265_p10 = scmp.ne.s32.totalorder %s1706_s1, %s2264_s23  ;;  %p2270_p12 = scmp.lt.s32.totalorder %s2264_s23, %s2264_s23 }
  0x29   :  { %1866 = vmatprep.subr.bf16.mxu1 %v2089_v20  ;;  %v2083_v36 = vld [vmem:[#allocation2 + $0x58] sm:$0xff]   ;;  %v2084_v37 = vld [vmem:[#allocation2 + $0x60] sm:$0xff]   ;;  %v2085_v38 = vld [vmem:[#allocation2 + $0x68] sm:$0xff]  }
  0x2a   :  { %v2087_v39 = vld [vmem:[#allocation2 + $0x70] sm:$0xff]   ;;  %v2090_v40 = vld [vmem:[#allocation2 + $0x78] sm:$0xff]   ;;  %p2271_p13 = por %p2270_p12, %p2269_p11 }
  0x2b   :  { %336 = vmatpush1.bf16.msra.mxu0 %v2059_v8 }
  0x2c   :  { %337 = vmatprep.subr.bf16.mxu0 %v2060_v10  ;;  %1867 = vmatpush3.bf16.msra.mxu1 %v2089_v20  ;;  %p2272_p0 = pnand %p2271_p13, %p2265_p10 }
  0x2d   :  { %1868 = vmatprep.subr.bf16.mxu1 %v2091_v21 }
  0x2f   :  { %338 = vmatpush1.bf16.msra.mxu0 %v2062_v11 }
  0x30   :  { %339 = vmatprep.subr.bf16.mxu0 %v2063_v12  ;;  %1869 = vmatpush3.bf16.msra.mxu1 %v2091_v21 }
  0x31   :  { %1870 = vmatprep.subr.bf16.mxu1 %v2092_v22 }
  0x33   :  { %340 = vmatpush1.bf16.msra.mxu0 %v2065_v13 }
  0x34   :  { %341 = vmatprep.subr.bf16.mxu0 %v2066_v14  ;;  %1871 = vmatpush3.bf16.msra.mxu1 %v2092_v22 }
  0x35   :  { %1872 = vmatprep.subr.bf16.mxu1 %v2093_v24 }
  0x37   :  { %342 = vmatpush1.bf16.msra.mxu0 %v2068_v15 }
  0x38   :  { %343 = vmatprep.subr.bf16.mxu0 %v2069_v16  ;;  %1873 = vmatpush3.bf16.msra.mxu1 %v2093_v24 }
  0x39   :  { %1874 = vmatprep.subr.bf16.mxu1 %v2094_v25 }
  0x3b   :  { %344 = vmatpush1.bf16.msra.mxu0 %v2071_v18 }
  0x3c   :  { %1875 = vmatpush3.bf16.msra.mxu1 %v2094_v25 }
  0x3d   :  { %1876 = vmatprep.subr.bf16.mxu1 %v2095_v27 }
  0x3e   :  { %362 = vmatmul.mubr.bf16.vlgmr.msra.gmra.mxu0 %v2072_v9 }
  0x3f   :  { %371 = vmatprep.mubr.bf16.mxu0 %v2296_v0 }
  0x40   :  { %1877 = vmatpush3.bf16.msra.mxu1 %v2095_v27 }
  0x43   :  { %1879 = vmatmul.mubr.bf16.vlgmr.msra.gmra.mxu1 %v2073_v23 }
  0x44   :  { %1882 = vmatprep.mubr.bf16.mxu1 %v2074_v26 }
  0x46   :  { %372 = vmatmul.mubr.bf16.gmra.mxu0 %v2073_v23 }
  0x47   :  { %381 = vmatprep.mubr.bf16.mxu0 %v2296_v0 }
  0x4b   :  { %1883 = vmatmul.mubr.bf16.gmra.mxu1 %v2075_v28 }
  0x4c   :  { %1886 = vmatprep.mubr.bf16.mxu1 %v2076_v29 }
  0x4e   :  { %382 = vmatmul.mubr.bf16.gmra.mxu0 %v2074_v26 }
  0x4f   :  { %391 = vmatprep.mubr.bf16.mxu0 %v2296_v0 }
  0x53   :  { %1887 = vmatmul.mubr.bf16.gmra.mxu1 %v2077_v30 }
  0x54   :  { %1890 = vmatprep.mubr.bf16.mxu1 %v2078_v31 }
  0x56   :  { %392 = vmatmul.mubr.bf16.gmra.mxu0 %v2075_v28 }
  0x57   :  { %401 = vmatprep.mubr.bf16.mxu0 %v2296_v0 }
  0x5b   :  { %1891 = vmatmul.mubr.bf16.gmra.mxu1 %v2079_v32 }
  0x5c   :  { %1894 = vmatprep.mubr.bf16.mxu1 %v2080_v33 }
  0x5e   :  { %402 = vmatmul.mubr.bf16.gmra.mxu0 %v2076_v29 }
  0x5f   :  { %411 = vmatprep.mubr.bf16.mxu0 %v2296_v0 }
  0x63   :  { %1895 = vmatmul.mubr.bf16.gmra.mxu1 %v2081_v34 }
  0x64   :  { %1898 = vmatprep.mubr.bf16.mxu1 %v2082_v35 }
  0x66   :  { %412 = vmatmul.mubr.bf16.gmra.mxu0 %v2077_v30 }
  0x67   :  { %421 = vmatprep.mubr.bf16.mxu0 %v2296_v0 }
  0x6b   :  { %1899 = vmatmul.mubr.bf16.gmra.mxu1 %v2083_v36 }
  0x6c   :  { %1902 = vmatprep.mubr.bf16.mxu1 %v2084_v37 }
  0x6e   :  { %422 = vmatmul.mubr.bf16.gmra.mxu0 %v2078_v31 }
  0x6f   :  { %431 = vmatprep.mubr.bf16.mxu0 %v2296_v0 }
  0x73   :  { %1903 = vmatmul.mubr.bf16.gmra.mxu1 %v2085_v38 }
  0x74   :  { %1906 = vmatprep.mubr.bf16.mxu1 %v2087_v39 }
  0x76   :  { %432 = vmatmul.mubr.bf16.gmra.mxu0 %v2079_v32 }
  0x77   :  { %441 = vmatprep.mubr.bf16.mxu0 %v2296_v0 }
  0x7b   :  { %1907 = vmatmul.mubr.bf16.gmra.mxu1 %v2090_v40 }
  0x7e   :  { %442 = vmatmul.mubr.bf16.gmra.mxu0 %v2080_v33 }
  0x7f   :  { %451 = vmatprep.mubr.bf16.mxu0 %v2296_v0 }
  0x86   :  { %452 = vmatmul.mubr.bf16.gmra.mxu0 %v2081_v34 }
  0x87   :  { %461 = vmatprep.mubr.bf16.mxu0 %v2296_v0 }
  0x8e   :  { %462 = vmatmul.mubr.bf16.gmra.mxu0 %v2082_v35 }
  0x8f   :  { %471 = vmatprep.mubr.bf16.mxu0 %v2296_v0 }
  0x96   :  { %472 = vmatmul.mubr.bf16.gmra.mxu0 %v2083_v36 }
  0x97   :  { %481 = vmatprep.mubr.bf16.mxu0 %v2296_v0 }
  0x9e   :  { %482 = vmatmul.mubr.bf16.gmra.mxu0 %v2084_v37 }
  0x9f   :  { %491 = vmatprep.mubr.bf16.mxu0 %v2296_v0 }
  0xa6   :  { %492 = vmatmul.mubr.bf16.gmra.mxu0 %v2085_v38 }
  0xa7   :  { %501 = vmatprep.mubr.bf16.mxu0 %v2296_v0 }
  0xae   :  { %502 = vmatmul.mubr.bf16.gmra.mxu0 %v2087_v39 }
  0xaf   :  { %511 = vmatprep.mubr.bf16.mxu0 %v2296_v0 }
  0xb6   :  { %512 = vmatmul.mubr.bf16.gmra.mxu0 %v2090_v40 }
  0xfe   :  { %v363_v41 = vpop.f32.mrf.mxu0 }
 0x100   :  { %v365_v42 = vpop.f32.mrf.mxu0 }
 0x102   :  { %v367_v43 = vpop.f32.mrf.mxu0 }
 0x103   :  { %v683_v44 = vpack.c.bf16 %v367_v43, %v363_v41  ;;  %v2349_v2 = vpop.f32.mrf.mxu1 }
 0x104   :  { %v369_v45 = vpop.f32.mrf.mxu0 }
 0x105   :  { %1918 = vmatprep.mubr.bf16.mxu1 %v683_v44  ;;  %v2351_v4 = vpop.f32.mrf.mxu1  ;;  %v699_v10 = vpack.c.bf16 %v369_v45, %v365_v42 }
 0x106   :  { %v373_v46 = vpop.f32.mrf.mxu0 }
 0x107   :  { %v2355_v6 = vpop.f32.mrf.mxu1 }
 0x108   :  { %v375_v47 = vpop.f32.mrf.mxu0 }
 0x109   :  { %v2357_v8 = vpop.f32.mrf.mxu1 }
 0x10a   :  { %v377_v48 = vpop.f32.mrf.mxu0 }
 0x10b   :  { %v2361_v11 = vpop.f32.mrf.mxu1  ;;  %v684_v25 = vpack.c.bf16 %v377_v48, %v373_v46 }
 0x10c   :  { %v379_v49 = vpop.f32.mrf.mxu0 }
 0x10d   :  { %v700_v1 = vpack.c.bf16 %v379_v49, %v375_v47  ;;  %v2363_v13 = vpop.f32.mrf.mxu1 }
 0x10e   :  { %v383_v50 = vpop.f32.mrf.mxu0 }
 0x10f   :  { %v2367_v15 = vpop.f32.mrf.mxu1 }
 0x110   :  { %v385_v51 = vpop.f32.mrf.mxu0 }
 0x111   :  { %v2369_v17 = vpop.f32.mrf.mxu1 }
 0x112   :  { %v387_v52 = vpop.f32.mrf.mxu0 }
 0x113   :  { %v2373_v19 = vpop.f32.mrf.mxu1  ;;  %v685_v28 = vpack.c.bf16 %v387_v52, %v383_v50 }
 0x114   :  { %v389_v53 = vpop.f32.mrf.mxu0 }
 0x115   :  { %v701_v60 = vpack.c.bf16 %v389_v53, %v385_v51  ;;  %v2375_v21 = vpop.f32.mrf.mxu1 }
 0x116   :  { %v2337_v54 = vpop.f32.mrf.mxu0 }
 0x117   :  { %v2379_v23 = vpop.f32.mrf.mxu1 }
 0x118   :  { %v395_v55 = vpop.f32.mrf.mxu0 }
 0x119   :  { %v2381_v27 = vpop.f32.mrf.mxu1 }
 0x11a   :  { %v2339_v56 = vpop.f32.mrf.mxu0 }
 0x11b   :  { %v2383_v31 = vpop.f32.mrf.mxu1  ;;  %v686_v38 = vpack.c.bf16 %v2339_v56, %v2337_v54 }
 0x11c   :  { %v399_v57 = vpop.f32.mrf.mxu0 }
 0x11d   :  { %v702_v58 = vpack.c.bf16 %v399_v57, %v395_v55  ;;  %v2387_v33 = vpop.f32.mrf.mxu1 }
 0x11e   :  { %v2341_v59 = vpop.f32.mrf.mxu0 }
 0x11f   :  { %1910 = vmatprep.subr.bf16.mxu1 %v702_v58  ;;  %v2389_v36 = vpop.f32.mrf.mxu1 }
 0x120   :  { %v2343_v61 = vpop.f32.mrf.mxu0  ;;  %1911 = vmatpush3.bf16.xpose.msra.mxu1 %v702_v58 }
 0x121   :  { %1912 = vmatprep.subr.bf16.mxu1 %v701_v60  ;;  %v2395_v39 = vpop.f32.mrf.mxu1 }
 0x122   :  { %v407_v62 = vpop.f32.mrf.mxu0 }
 0x123   :  { %v687_v40 = vpack.c.bf16 %v407_v62, %v2341_v59  ;;  %v1896_v43 = vpop.f32.mrf.mxu1 }
 0x124   :  { %v2345_v63 = vpop.f32.mrf.mxu0 }
 0x125   :  { %v620_v45 = vpop.f32.mrf.mxu1  ;;  %v703_v53 = vpack.c.bf16 %v2345_v63, %v2343_v61 }
 0x126   :  { %v2347_v0 = vpop.f32.mrf.mxu0 }
 0x127   :  { %v1897_v47 = vpop.f32.mrf.mxu1 }
 0x128   :  { %v415_v3 = vpop.f32.mrf.mxu0  ;;  %1913 = vmatpush3.bf16.xpose.msra.mxu1 %v701_v60  ;;  %v2402_v49 = vpack.c.bf16 %v1897_v47, %v1896_v43 }
 0x129   :  { %1914 = vmatprep.subr.bf16.mxu1 %v700_v1  ;;  %v623_v50 = vpop.f32.mrf.mxu1 }
 0x12a   :  { %v2353_v5 = vpop.f32.mrf.mxu0  ;;  %v2406_v52 = vpack.c.bf16 %v623_v50, %v620_v45 }
 0x12b   :  { %v2410_v54 = vpop.f32.mrf.mxu1 }
 0x12c   :  { %v419_v7 = vpop.f32.mrf.mxu0 }
 0x12d   :  { %v704_v42 = vpack.c.bf16 %v419_v7, %v415_v3  ;;  %v636_v56 = vpop.f32.mrf.mxu1 }
 0x12e   :  { %v2359_v9 = vpop.f32.mrf.mxu0 }
 0x12f   :  { %v2412_v58 = vpop.f32.mrf.mxu1 }
 0x130   :  { %v425_v12 = vpop.f32.mrf.mxu0  ;;  %1915 = vmatpush3.bf16.xpose.msra.mxu1 %v700_v1 }
 0x131   :  { %1916 = vmatprep.subr.bf16.mxu1 %v699_v10  ;;  %v639_v60 = vpop.f32.mrf.mxu1 }
 0x132   :  { %v2365_v14 = vpop.f32.mrf.mxu0  ;;  %v2416_v1 = vpack.c.bf16 %v639_v60, %v636_v56 }
 0x133   :  { %v1904_v3 = vpop.f32.mrf.mxu1 }
 0x134   :  { %v429_v16 = vpop.f32.mrf.mxu0 }
 0x135   :  { %v705_v30 = vpack.c.bf16 %v429_v16, %v425_v12 }
 0x136   :  { %v2371_v18 = vpop.f32.mrf.mxu0 }
 0x138   :  { %v435_v20 = vpop.f32.mrf.mxu0  ;;  %1917 = vmatpush3.bf16.xpose.msra.mxu1 %v699_v10  ;;  %v652_v10 = vpop.f32.mrf.mxu1 }
 0x13a   :  { %v2377_v22 = vpop.f32.mrf.mxu0  ;;  %v1905_v63 = vpop.f32.mrf.mxu1 }
 0x13b   :  { %v2418_v16 = vpack.c.bf16 %v1905_v63, %v1904_v3 }
 0x13c   :  { %v439_v24 = vpop.f32.mrf.mxu0 }
 0x13d   :  { %v706_v26 = vpack.c.bf16 %v439_v24, %v435_v20  ;;  %v688_v20 = vpack.c.bf16 %v2353_v5, %v2347_v0  ;;  %v690_v0 = vpack.c.bf16 %v2377_v22, %v2371_v18  ;;  %v718_v18 = vpack.c.bf16 %v2367_v15, %v2361_v11 }
 0x13e   :  { %v443_v29 = vpop.f32.mrf.mxu0  ;;  %v716_v11 = vpack.c.bf16 %v2355_v6, %v2349_v2 }
 0x13f   :  { %1919 = vmatmul.mubr.bf16.vlgmr.msra.gmra.mxu1 %v684_v25  ;;  %1926 = vmatprep.subr.bf16.mxu1 %v706_v26  ;;  %v655_v25 = vpop.f32.mrf.mxu1 }
 0x140   :  { %v2385_v32 = vpop.f32.mrf.mxu0  ;;  %1922 = vmatprep.mubr.bf16.mxu1 %v685_v28  ;;  %1927 = vmatpush3.bf16.xpose.msra.mxu1 %v706_v26  ;;  %v689_v26 = vpack.c.bf16 %v2365_v14, %v2359_v9 }
 0x141   :  { %1928 = vmatprep.subr.bf16.mxu1 %v705_v30 }
 0x142   :  { %v447_v34 = vpop.f32.mrf.mxu0 }
 0x143   :  { %v691_v35 = vpack.c.bf16 %v447_v34, %v443_v29  ;;  %v2424_v29 = vpack.c.bf16 %v655_v25, %v652_v10 }
 0x144   :  { %v2391_v37 = vpop.f32.mrf.mxu0 }
 0x145   :  { %1950 = vmatprep.mubr.bf16.mxu0 %v691_v35  ;;  %v707_v47 = vpack.c.bf16 %v2391_v37, %v2385_v32  ;;  %v717_v37 = vpack.c.bf16 %v2369_v17, %v2363_v13  ;;  %v2444_v13 = vpack.c.bf16 %v2412_v58, %v2410_v54  ;;  %v720_v54 = vpack.c.bf16 %v2379_v23, %v2373_v19 }
 0x146   :  { %v2398_v41 = vpop.f32.mrf.mxu0 }
 0x147   :  { %1923 = vmatmul.mubr.bf16.gmra.mxu1 %v686_v38 }
 0x148   :  { %v455_v44 = vpop.f32.mrf.mxu0  ;;  %1929 = vmatpush3.bf16.xpose.msra.mxu1 %v705_v30  ;;  %1934 = vmatprep.mubr.bf16.mxu1 %v687_v40 }
 0x149   :  { %1930 = vmatprep.subr.bf16.mxu1 %v704_v42 }
 0x14a   :  { %v2400_v46 = vpop.f32.mrf.mxu0 }
 0x14c   :  { %v459_v48 = vpop.f32.mrf.mxu0 }
 0x14e   :  { %v2404_v51 = vpop.f32.mrf.mxu0 }
 0x150   :  { %v465_v55 = vpop.f32.mrf.mxu0  ;;  %1931 = vmatpush3.bf16.xpose.msra.mxu1 %v704_v42  ;;  %v708_v42 = vpack.c.bf16 %v459_v48, %v455_v44 }
 0x151   :  { %1932 = vmatprep.subr.bf16.mxu1 %v703_v53 }
 0x152   :  { %v467_v57 = vpop.f32.mrf.mxu0 }
 0x153   :  { %v693_v32 = vpack.c.bf16 %v467_v57, %v2404_v51  ;;  %v1908_v51 = vpop.f32.mrf.mxu1 }
 0x154   :  { %v469_v59 = vpop.f32.mrf.mxu0 }
 0x155   :  { %v709_v30 = vpack.c.bf16 %v469_v59, %v465_v55  ;;  %v692_v59 = vpack.c.bf16 %v2400_v46, %v2398_v41  ;;  %v715_v41 = vpack.c.bf16 %v2357_v8, %v2351_v4  ;;  %v722_v4 = vpack.c.bf16 %v2389_v36, %v2383_v31  ;;  %v2453_v57 = vpop.f32.mrf.mxu1 }
 0x156   :  { %v2414_v62 = vpop.f32.mrf.mxu0  ;;  %v721_v8 = vpack.c.bf16 %v2395_v39, %v2387_v33  ;;  %v719_v31 = vpack.c.bf16 %v2381_v27, %v2375_v21 }
 0x157   :  { %v1909_v36 = vpop.f32.mrf.mxu1 }
 0x158   :  { %v475_v7 = vpop.f32.mrf.mxu0  ;;  %1933 = vmatpush3.bf16.xpose.msra.mxu1 %v703_v53  ;;  %v2457_v33 = vpack.c.bf16 %v1909_v36, %v1908_v51 }
 0x159   :  { %v2460_v39 = vpop.f32.mrf.mxu1 }
 0x15a   :  { %v477_v61 = vpop.f32.mrf.mxu0 }
 0x15b   :  { %v694_v15 = vpack.c.bf16 %v477_v61, %v2414_v62 }
 0x15c   :  { %v479_v12 = vpop.f32.mrf.mxu0 }
 0x15d   :  { %v710_v24 = vpack.c.bf16 %v479_v12, %v475_v7 }
 0x15e   :  { %v483_v28 = vpop.f32.mrf.mxu0 }
 0x15f   :  { %1935 = vmatmul.mubr.bf16.vlgmr.msra.gmra.mxu1 %v688_v20  ;;  %1942 = vmatprep.subr.bf16.mxu0 %v710_v24 }
 0x160   :  { %v485_v34 = vpop.f32.mrf.mxu0  ;;  %1938 = vmatprep.mubr.bf16.mxu1 %v689_v26  ;;  %1943 = vmatpush3.bf16.xpose.msra.mxu0 %v710_v24 }
 0x161   :  { %1944 = vmatprep.subr.bf16.mxu0 %v709_v30 }
 0x162   :  { %v487_v35 = vpop.f32.mrf.mxu0 }
 0x163   :  { %v695_v5 = vpack.c.bf16 %v487_v35, %v483_v28 }
 0x164   :  { %v489_v38 = vpop.f32.mrf.mxu0 }
 0x165   :  { %v711_v2 = vpack.c.bf16 %v489_v38, %v485_v34 }
 0x166   :  { %v493_v40 = vpop.f32.mrf.mxu0 }
 0x167   :  { %1939 = vmatmul.mubr.bf16.gmra.mxu1 %v690_v0 }
 0x168   :  { %v495_v9 = vpop.f32.mrf.mxu0  ;;  %1945 = vmatpush3.bf16.xpose.msra.mxu0 %v709_v30  ;;  %1966 = vmatprep.mubr.bf16.mxu1 %v695_v5 }
 0x169   :  { %1946 = vmatprep.subr.bf16.mxu0 %v708_v42 }
 0x16a   :  { %v497_v14 = vpop.f32.mrf.mxu0 }
 0x16b   :  { %v696_v6 = vpack.c.bf16 %v497_v14, %v493_v40 }
 0x16c   :  { %v499_v43 = vpop.f32.mrf.mxu0 }
 0x16d   :  { %v712_v46 = vpack.c.bf16 %v499_v43, %v495_v9 }
 0x16e   :  { %v503_v45 = vpop.f32.mrf.mxu0 }
 0x170   :  { %v505_v50 = vpop.f32.mrf.mxu0  ;;  %1947 = vmatpush3.bf16.xpose.msra.mxu0 %v708_v42 }
 0x171   :  { %1948 = vmatprep.subr.bf16.mxu0 %v707_v47 }
 0x172   :  { %v507_v53 = vpop.f32.mrf.mxu0 }
 0x173   :  { %v697_v17 = vpack.c.bf16 %v507_v53, %v503_v45 }
 0x174   :  { %v509_v55 = vpop.f32.mrf.mxu0 }
 0x175   :  { %v713_v3 = vpack.c.bf16 %v509_v55, %v505_v50 }
 0x176   :  { %v513_v22 = vpop.f32.mrf.mxu0 }
 0x178   :  { %v515_v44 = vpop.f32.mrf.mxu0  ;;  %1949 = vmatpush3.bf16.xpose.msra.mxu0 %v707_v47 }
 0x179   :  { %1974 = vmatprep.subr.bf16.mxu0 %v718_v18 }
 0x17a   :  { %v517_v48 = vpop.f32.mrf.mxu0 }
 0x17b   :  { %v698_v58 = vpack.c.bf16 %v517_v48, %v513_v22 }
 0x17c   :  { %v519_v56 = vpop.f32.mrf.mxu0 }
 0x17d   :  { %v714_v60 = vpack.c.bf16 %v519_v56, %v515_v44 }
 0x17f   :  { %1951 = vmatmul.mubr.bf16.vlgmr.msra.gmra.mxu0 %v692_v59  ;;  %1958 = vmatprep.subr.bf16.mxu1 %v714_v60 }
 0x180   :  { %1954 = vmatprep.mubr.bf16.mxu0 %v693_v32  ;;  %1959 = vmatpush3.bf16.xpose.msra.mxu1 %v714_v60 }
 0x181   :  { %1960 = vmatprep.subr.bf16.mxu1 %v713_v3  ;;  %1975 = vmatpush3.bf16.msra.mxu0 %v718_v18 }
 0x182   :  { %1976 = vmatprep.subr.bf16.mxu0 %v717_v37 }
 0x185   :  { %1977 = vmatpush3.bf16.msra.mxu0 %v717_v37 }
 0x186   :  { %1978 = vmatprep.subr.bf16.mxu0 %v716_v11 }
 0x187   :  { %1955 = vmatmul.mubr.bf16.gmra.mxu0 %v694_v15 }
 0x188   :  { %1961 = vmatpush3.bf16.xpose.msra.mxu1 %v713_v3 }
 0x189   :  { %1962 = vmatprep.subr.bf16.mxu1 %v712_v46  ;;  %1979 = vmatpush3.bf16.msra.mxu0 %v716_v11 }
 0x18a   :  { %1980 = vmatprep.subr.bf16.mxu0 %v715_v41 }
 0x18d   :  { %1981 = vmatpush3.bf16.msra.mxu0 %v715_v41 }
 0x18e   :  { %2006 = vmatprep.subr.bf16.mxu0 %v2444_v13 }
 0x190   :  { %1963 = vmatpush3.bf16.xpose.msra.mxu1 %v712_v46 }
 0x191   :  { %1964 = vmatprep.subr.bf16.mxu1 %v711_v2 }
 0x198   :  { %1965 = vmatpush3.bf16.xpose.msra.mxu1 %v711_v2 }
 0x199   :  { %1990 = vmatprep.subr.bf16.mxu1 %v722_v4 }
 0x19f   :  { %1967 = vmatmul.mubr.bf16.vlgmr.msra.gmra.mxu1 %v696_v6 }
 0x1a0   :  { %1970 = vmatprep.mubr.bf16.mxu1 %v697_v17  ;;  %1991 = vmatpush3.bf16.msra.mxu1 %v722_v4 }
 0x1a1   :  { %1992 = vmatprep.subr.bf16.mxu1 %v721_v8 }
 0x1a4   :  { %1993 = vmatpush3.bf16.msra.mxu1 %v721_v8 }
 0x1a5   :  { %1994 = vmatprep.subr.bf16.mxu1 %v720_v54 }
 0x1a7   :  { %1971 = vmatmul.mubr.bf16.gmra.mxu1 %v698_v58 }
 0x1a8   :  { %1995 = vmatpush3.bf16.msra.mxu1 %v720_v54 }
 0x1a9   :  { %1996 = vmatprep.subr.bf16.mxu1 %v719_v31 }
 0x1ac   :  { %1997 = vmatpush3.bf16.msra.mxu1 %v719_v31 }
 0x1ad   :  { %2022 = vmatprep.subr.bf16.mxu1 %v2457_v33 }
 0x1ff   :  { %v2462_v19 = vpop.f32.mrf.mxu1 }
 0x200   :  { %v998_v23 = vsel %vm991_vm0, %v2462_v19, -inf }
 0x201   :  { %999 = vmax.xlane.f32.xlu0 %v998_v23  ;;  %v2466_v21 = vpop.f32.mrf.mxu1 }
 0x202   :  { %v992_v62 = vsel %vm991_vm0, %v2466_v21, -inf }
 0x203   :  { %v2468_v27 = vpop.f32.mrf.mxu1 }
 0x204   :  { %v1001_v7 = vsel %vm991_vm0, %v2468_v27, -inf }
 0x205   :  { %993 = vmax.xlane.f32.xlu0 %v992_v62  ;;  %1002 = vmax.xlane.f32.xlu1 %v1001_v7  ;;  %v2474_v10 = vpop.f32.mrf.mxu1 }
 0x206   :  { %v995_v63 = vsel %vm991_vm0, %v2474_v10, -inf }
 0x207   :  { %v2476_v61 = vpop.f32.mrf.mxu1 }
 0x208   :  { %v1010_v24 = vsel %vm991_vm0, %v2476_v61, -inf }
 0x209   :  { %996 = vmax.xlane.f32.xlu0 %v995_v63  ;;  %v2480_v12 = vpop.f32.mrf.mxu1 }
 0x20a   :  { %v1004_v28 = vsel %vm991_vm0, %v2480_v12, -inf }
 0x20b   :  { %v2482_v20 = vpop.f32.mrf.mxu1 }
 0x20c   :  { %v1013_v25 = vsel %vm991_vm0, %v2482_v20, -inf }
 0x20d   :  { %1011 = vmax.xlane.f32.xlu0 %v1010_v24  ;;  %1014 = vmax.xlane.f32.xlu1 %v1013_v25  ;;  %v2488_v26 = vpop.f32.mrf.mxu1 }
 0x20e   :  { %v1007_v30 = vsel %vm991_vm0, %v2488_v26, -inf }
 0x211   :  { %1005 = vmax.xlane.f32.xlu0 %v1004_v28  ;;  %1008 = vmax.xlane.f32.xlu1 %v1007_v30 }
 0x21f   :  { %v2494_v34 = vpop.f32.mrf.mxu1 }
 0x220   :  { %v1022_v35 = vsel %vm991_vm0, %v2494_v34, -inf }
 0x221   :  { %1023 = vmax.xlane.f32.xlu0 %v1022_v35  ;;  %v2498_v38 = vpop.f32.mrf.mxu1 }
 0x222   :  { %v1016_v0 = vsel %vm991_vm0, %v2498_v38, -inf }
 0x223   :  { %1017 = vmax.xlane.f32.xlu1 %v1016_v0  ;;  %v2502_v5 = vpop.f32.mrf.mxu1 }
 0x224   :  { %v1025_v42 = vsel %vm991_vm0, %v2502_v5, -inf }
 0x225   :  { %v2504_v40 = vpop.f32.mrf.mxu1 }
 0x226   :  { %v1019_v45 = vsel %vm991_vm0, %v2504_v40, -inf }
 0x227   :  { %1026 = vmax.xlane.f32.xlu1 %v1025_v42  ;;  %v2508_v9 = vpop.f32.mrf.mxu1 }
 0x228   :  { %v1034_v14 = vsel %vm991_vm0, %v2508_v9, -inf }
 0x229   :  { %1035 = vmax.xlane.f32.xlu0 %v1034_v14  ;;  %v2512_v43 = vpop.f32.mrf.mxu1 }
 0x22a   :  { %v1028_v50 = vsel %vm991_vm0, %v2512_v43, -inf }
 0x22b   :  { %1020 = vmax.xlane.f32.xlu1 %v1019_v45  ;;  %v2516_v47 = vpop.f32.mrf.mxu1 }
 0x22c   :  { %v1037_v53 = vsel %vm991_vm0, %v2516_v47, -inf }
 0x22d   :  { %1029 = vmax.xlane.f32.xlu0 %v1028_v50  ;;  %v2522_v55 = vpop.f32.mrf.mxu1 }
 0x22e   :  { %v1031_v18 = vsel %vm991_vm0, %v2522_v55, -inf }
 0x22f   :  { %1038 = vmax.xlane.f32.xlu1 %v1037_v53 }
 0x233   :  { %1032 = vmax.xlane.f32.xlu1 %v1031_v18 }
 0x23f   :  { %v2526_v22 = vpop.f32.mrf.mxu0 }
 0x240   :  { %v1046_v44 = vsel %vm991_vm0, %v2526_v22, -inf }
 0x241   :  { %1047 = vmax.xlane.f32.xlu0 %v1046_v44  ;;  %v2530_v48 = vpop.f32.mrf.mxu0 }
 0x242   :  { %v1040_v59 = vsel %vm991_vm0, %v2530_v48, -inf }
 0x243   :  { %v2532_v56 = vpop.f32.mrf.mxu0 }
 0x244   :  { %v1049_v60 = vsel %vm991_vm0, %v2532_v56, -inf }
 0x245   :  { %1041 = vmax.xlane.f32.xlu0 %v1040_v59  ;;  %1050 = vmax.xlane.f32.xlu1 %v1049_v60  ;;  %v2538_v32 = vpop.f32.mrf.mxu0 }
 0x246   :  { %v1043_v3 = vsel %vm991_vm0, %v2538_v32, -inf }
 0x247   :  { %v2540_v37 = vpop.f32.mrf.mxu0 }
 0x248   :  { %v1058_v36 = vsel %vm991_vm0, %v2540_v37, -inf }
 0x249   :  { %1044 = vmax.xlane.f32.xlu1 %v1043_v3  ;;  %v2544_v11 = vpop.f32.mrf.mxu0 }
 0x24a   :  { %v1052_v15 = vsel %vm991_vm0, %v2544_v11, -inf }
 0x24b   :  { %1053 = vmax.xlane.f32.xlu0 %v1052_v15  ;;  %v2548_v41 = vpop.f32.mrf.mxu0 }
 0x24c   :  { %v1061_v63 = vsel %vm991_vm0, %v2548_v41, -inf }
 0x24d   :  { %v2550_v46 = vpop.f32.mrf.mxu0 }
 0x24e   :  { %v1055_v2 = vsel %vm991_vm0, %v2550_v46, -inf }
 0x24f   :  { %1056 = vmax.xlane.f32.xlu1 %v1055_v2 }
 0x25f   :  { %v2554_v4 = vpop.f32.mrf.mxu1 }
 0x260   :  { %v1070_v6 = vsel %vm991_vm0, %v2554_v4, -inf }
 0x261   :  { %1071 = vmax.xlane.f32.xlu0 %v1070_v6  ;;  %v2558_v8 = vpop.f32.mrf.mxu1 }
 0x262   :  { %v1064_v51 = vsel %vm991_vm0, %v2558_v8, -inf }
 0x263   :  { %v2560_v17 = vpop.f32.mrf.mxu1 }
 0x264   :  { %v1073_v54 = vsel %vm991_vm0, %v2560_v17, -inf }
 0x265   :  { %1065 = vmax.xlane.f32.xlu0 %v1064_v51  ;;  %1074 = vmax.xlane.f32.xlu1 %v1073_v54  ;;  %v2566_v58 = vpop.f32.mrf.mxu1 }
 0x266   :  { %v1067_v23 = vsel %vm991_vm0, %v2566_v58, -inf }
 0x267   :  { %v2568_v31 = vpop.f32.mrf.mxu1 }
 0x268   :  { %v1082_v28 = vsel %vm991_vm0, %v2568_v31, -inf }
 0x269   :  { %1059 = vmax.xlane.f32.xlu0 %v1058_v36  ;;  %1068 = vmax.xlane.f32.xlu1 %v1067_v23  ;;  %v2574_v62 = vpop.f32.mrf.mxu1 }
 0x26a   :  { %v1076_v24 = vsel %vm991_vm0, %v2574_v62, -inf }
 0x26b   :  { %v2576_v7 = vpop.f32.mrf.mxu1 }
 0x26c   :  { %v1085_v35 = vsel %vm991_vm0, %v2576_v7, -inf }
 0x26d   :  { %1062 = vmax.xlane.f32.xlu1 %v1061_v63  ;;  %1077 = vmax.xlane.f32.xlu0 %v1076_v24  ;;  %v2582_v25 = vpop.f32.mrf.mxu1 }
 0x26e   :  { %v1079_v30 = vsel %vm991_vm0, %v2582_v25, -inf }
 0x271   :  { %1083 = vmax.xlane.f32.xlu0 %v1082_v28  ;;  %1080 = vmax.xlane.f32.xlu1 %v1079_v30 }
 0x275   :  { %1086 = vmax.xlane.f32.xlu1 %v1085_v35 }
 0x28a   :  { %v1000_v0 = vpop.xlane.xlu0 %999 }
 0x28b   :  { %v1090_v42 = vsub.f32 %v2462_v19, %v1000_v0 }
 0x28d   :  { %v1124_v14 = vmul.f32 1.442695, %v1090_v42 }
 0x28e   :  { %v994_v45 = vpop.xlane.xlu0 %993  ;;  %v1003_v50 = vpop.xlane.xlu1 %1002 }
 0x28f   :  { %2096 = vpow2.f32 %v1124_v14  ;;  %v1088_v53 = vsub.f32 %v2466_v21, %v994_v45  ;;  %v1091_v18 = vsub.f32 %v2468_v27, %v1003_v50 }
 0x291   :  { %v1120_v44 = vmul.f32 1.442695, %v1088_v53  ;;  %v1126_v59 = vmul.f32 1.442695, %v1091_v18 }
 0x292   :  { %v997_v60 = vpop.xlane.xlu0 %996 }
 0x293   :  { %2098 = vpow2.f32 %v1120_v44  ;;  %v1089_v3 = vsub.f32 %v2474_v10, %v997_v60 }
 0x294   :  { %2100 = vpow2.f32 %v1126_v59 }
 0x295   :  { %v1122_v15 = vmul.f32 1.442695, %v1089_v3 }
 0x296   :  { %v1012_v2 = vpop.xlane.xlu0 %1011  ;;  %v1015_v6 = vpop.xlane.xlu1 %1014 }
 0x297   :  { %2102 = vpow2.f32 %v1122_v15  ;;  %v1094_v19 = vsub.f32 %v2476_v61, %v1012_v2  ;;  %v1095_v51 = vsub.f32 %v2482_v20, %v1015_v6 }
 0x299   :  { %v1132_v54 = vmul.f32 1.442695, %v1094_v19  ;;  %v1134_v36 = vmul.f32 1.442695, %v1095_v51 }
 0x29a   :  { %v1006_v21 = vpop.xlane.xlu0 %1005  ;;  %v1009_v23 = vpop.xlane.xlu1 %1008 }
 0x29b   :  { %2104 = vpow2.f32 %v1132_v54  ;;  %v1092_v27 = vsub.f32 %v2480_v12, %v1006_v21  ;;  %v1093_v63 = vsub.f32 %v2488_v26, %v1009_v23 }
 0x29c   :  { %v2598_v24 = vpop.eup %2096  ;;  %2106 = vpow2.f32 %v1134_v36 }
 0x29d   :  { %v1128_v10 = vmul.f32 1.442695, %v1092_v27  ;;  %v1130_v28 = vmul.f32 1.442695, %v1093_v63  ;;  %v1190_v30 = vsel %vm991_vm0, %v2598_v24, 0.0 }
 0x29e   :  { %1191 = vadd.xlane.f32.xlu0 %v1190_v30 }
 0x29f   :  { %2108 = vpow2.f32 %v1128_v10 }
 0x2a0   :  { %v2602_v61 = vpop.eup %2098  ;;  %2110 = vpow2.f32 %v1130_v28 }
 0x2a1   :  { %v2604_v20 = vpop.eup %2100  ;;  %v1184_v12 = vsel %vm991_vm0, %v2602_v61, 0.0 }
 0x2a2   :  { %1185 = vadd.xlane.f32.xlu0 %v1184_v12  ;;  %v1193_v26 = vsel %vm991_vm0, %v2604_v20, 0.0 }
 0x2a3   :  { %1194 = vadd.xlane.f32.xlu1 %v1193_v26 }
 0x2a4   :  { %v2610_v35 = vpop.eup %2102 }
 0x2a5   :  { %v1187_v0 = vsel %vm991_vm0, %v2610_v35, 0.0 }
 0x2a7   :  { %1188 = vadd.xlane.f32.xlu1 %v1187_v0 }
 0x2a8   :  { %v2614_v42 = vpop.eup %2104 }
 0x2a9   :  { %v2616_v14 = vpop.eup %2106  ;;  %v1202_v45 = vsel %vm991_vm0, %v2614_v42, 0.0 }
 0x2aa   :  { %v1024_v50 = vpop.xlane.xlu0 %1023  ;;  %1203 = vadd.xlane.f32.xlu0 %v1202_v45  ;;  %v1205_v53 = vsel %vm991_vm0, %v2616_v14, 0.0 }
 0x2ab   :  { %v1098_v18 = vsub.f32 %v2494_v34, %v1024_v50  ;;  %1206 = vadd.xlane.f32.xlu1 %v1205_v53 }
 0x2ac   :  { %v2623_v44 = vpop.eup %2108  ;;  %v1018_v59 = vpop.xlane.xlu1 %1017 }
 0x2ad   :  { %v2625_v60 = vpop.eup %2110  ;;  %v1140_v3 = vmul.f32 1.442695, %v1098_v18  ;;  %v1096_v15 = vsub.f32 %v2498_v38, %v1018_v59  ;;  %v1196_v2 = vsel %vm991_vm0, %v2623_v44, 0.0 }
 0x2ae   :  { %1197 = vadd.xlane.f32.xlu0 %v1196_v2  ;;  %v1199_v6 = vsel %vm991_vm0, %v2625_v60, 0.0 }
 0x2af   :  { %2112 = vpow2.f32 %v1140_v3  ;;  %v1136_v19 = vmul.f32 1.442695, %v1096_v15  ;;  %1200 = vadd.xlane.f32.xlu1 %v1199_v6 }
 0x2b0   :  { %v1027_v34 = vpop.xlane.xlu1 %1026 }
 0x2b1   :  { %2114 = vpow2.f32 %v1136_v19  ;;  %v1099_v51 = vsub.f32 %v2502_v5, %v1027_v34 }
 0x2b2   :  { %v1036_v54 = vpop.xlane.xlu0 %1035 }
 0x2b3   :  { %v1142_v36 = vmul.f32 1.442695, %v1099_v51  ;;  %v1102_v21 = vsub.f32 %v2508_v9, %v1036_v54 }
 0x2b4   :  { %v1021_v23 = vpop.xlane.xlu1 %1020 }
 0x2b5   :  { %2116 = vpow2.f32 %v1142_v36  ;;  %v1148_v38 = vmul.f32 1.442695, %v1102_v21  ;;  %v1097_v27 = vsub.f32 %v2504_v40, %v1021_v23 }
 0x2b6   :  { %v1030_v63 = vpop.xlane.xlu0 %1029 }
 0x2b7   :  { %2118 = vpow2.f32 %v1148_v38  ;;  %v1138_v10 = vmul.f32 1.442695, %v1097_v27  ;;  %v1100_v28 = vsub.f32 %v2512_v43, %v1030_v63 }
 0x2b8   :  { %v1039_v30 = vpop.xlane.xlu1 %1038 }
 0x2b9   :  { %2120 = vpow2.f32 %v1138_v10  ;;  %v1144_v12 = vmul.f32 1.442695, %v1100_v28  ;;  %v1103_v26 = vsub.f32 %v2516_v47, %v1039_v30 }
 0x2bb   :  { %2122 = vpow2.f32 %v1144_v12  ;;  %v1150_v5 = vmul.f32 1.442695, %v1103_v26 }
 0x2bc   :  { %v2637_v0 = vpop.eup %2112  ;;  %v1033_v9 = vpop.xlane.xlu1 %1032 }
 0x2bd   :  { %2124 = vpow2.f32 %v1150_v5  ;;  %v1101_v45 = vsub.f32 %v2522_v55, %v1033_v9  ;;  %v1214_v40 = vsel %vm991_vm0, %v2637_v0, 0.0 }
 0x2be   :  { %v2642_v50 = vpop.eup %2114  ;;  %1215 = vadd.xlane.f32.xlu0 %v1214_v40 }
 0x2bf   :  { %v1146_v43 = vmul.f32 1.442695, %v1101_v45  ;;  %v1208_v53 = vsel %vm991_vm0, %v2642_v50, 0.0 }
 0x2c1   :  { %2126 = vpow2.f32 %v1146_v43 }
 0x2c2   :  { %v2646_v47 = vpop.eup %2116  ;;  %1209 = vadd.xlane.f32.xlu0 %v1208_v53 }
 0x2c3   :  { %v1217_v18 = vsel %vm991_vm0, %v2646_v47, 0.0 }
 0x2c4   :  { %v2650_v59 = vpop.eup %2118  ;;  %1218 = vadd.xlane.f32.xlu1 %v1217_v18 }
 0x2c5   :  { %v1226_v55 = vsel %vm991_vm0, %v2650_v59, 0.0 }
 0x2c6   :  { %v2654_v3 = vpop.eup %2120  ;;  %1227 = vadd.xlane.f32.xlu0 %v1226_v55 }
 0x2c7   :  { %v1211_v15 = vsel %vm991_vm0, %v2654_v3, 0.0 }
 0x2c8   :  { %v2658_v2 = vpop.eup %2122  ;;  %1212 = vadd.xlane.f32.xlu1 %v1211_v15 }
 0x2c9   :  { %v1220_v6 = vsel %vm991_vm0, %v2658_v2, 0.0 }
 0x2ca   :  { %v2662_v19 = vpop.eup %2124  ;;  %v1048_v34 = vpop.xlane.xlu0 %1047  ;;  %1221 = vadd.xlane.f32.xlu0 %v1220_v6 }
 0x2cb   :  { %v1106_v51 = vsub.f32 %v2526_v22, %v1048_v34  ;;  %v1229_v54 = vsel %vm991_vm0, %v2662_v19, 0.0 }
 0x2cc   :  { %1230 = vadd.xlane.f32.xlu1 %v1229_v54 }
 0x2cd   :  { %v1156_v36 = vmul.f32 1.442695, %v1106_v51 }
 0x2ce   :  { %v2667_v21 = vpop.eup %2126  ;;  %v1042_v23 = vpop.xlane.xlu0 %1041 }
 0x2cf   :  { %v1051_v38 = vpop.xlane.xlu1 %1050  ;;  %2128 = vpow2.f32 %v1156_v36  ;;  %v1104_v27 = vsub.f32 %v2530_v48, %v1042_v23  ;;  %v1223_v10 = vsel %vm991_vm0, %v2667_v21, 0.0 }
 0x2d0   :  { %v1107_v63 = vsub.f32 %v2532_v56, %v1051_v38  ;;  %1224 = vadd.xlane.f32.xlu1 %v1223_v10 }
 0x2d1   :  { %v1152_v28 = vmul.f32 1.442695, %v1104_v27 }
 0x2d2   :  { %v1158_v22 = vmul.f32 1.442695, %v1107_v63 }
 0x2d3   :  { %v1045_v30 = vpop.xlane.xlu1 %1044  ;;  %2130 = vpow2.f32 %v1152_v28 }
 0x2d4   :  { %v1105_v12 = vsub.f32 %v2538_v32, %v1045_v30  ;;  %2132 = vpow2.f32 %v1158_v22  ;;  %v1054_v26 = vpop.xlane.xlu0 %1053 }
 0x2d5   :  { %v1108_v9 = vsub.f32 %v2544_v11, %v1054_v26 }
 0x2d6   :  { %v1154_v5 = vmul.f32 1.442695, %v1105_v12 }
 0x2d7   :  { %v1160_v45 = vmul.f32 1.442695, %v1108_v9 }
 0x2d8   :  { %2134 = vpow2.f32 %v1154_v5  ;;  %v1057_v48 = vpop.xlane.xlu1 %1056 }
 0x2d9   :  { %2136 = vpow2.f32 %v1160_v45  ;;  %v1109_v56 = vsub.f32 %v2550_v46, %v1057_v48 }
 0x2db   :  { %v1162_v40 = vmul.f32 1.442695, %v1109_v56 }
 0x2dc   :  { %v2676_v43 = vpop.eup %2128 }
 0x2dd   :  { %2138 = vpow2.f32 %v1162_v40  ;;  %v1238_v53 = vsel %vm991_vm0, %v2676_v43, 0.0 }
 0x2de   :  { %1239 = vadd.xlane.f32.xlu0 %v1238_v53 }
 0x2e0   :  { %v2680_v32 = vpop.eup %2130 }
 0x2e1   :  { %v2682_v18 = vpop.eup %2132  ;;  %v1232_v11 = vsel %vm991_vm0, %v2680_v32, 0.0 }
 0x2e2   :  { %1233 = vadd.xlane.f32.xlu0 %v1232_v11  ;;  %v1241_v55 = vsel %vm991_vm0, %v2682_v18, 0.0 }
 0x2e3   :  { %1242 = vadd.xlane.f32.xlu1 %v1241_v55 }
 0x2e5   :  { %v2688_v46 = vpop.eup %2134 }
 0x2e6   :  { %v1235_v15 = vsel %vm991_vm0, %v2688_v46, 0.0  ;;  %v2692_v6 = vpop.eup %2136 }
 0x2e7   :  { %1236 = vadd.xlane.f32.xlu1 %v1235_v15  ;;  %v1244_v34 = vsel %vm991_vm0, %v2692_v6, 0.0 }
 0x2e8   :  { %1245 = vadd.xlane.f32.xlu0 %v1244_v34 }
 0x2ea   :  { %v2696_v51 = vpop.eup %2138  ;;  %v1072_v54 = vpop.xlane.xlu0 %1071 }
 0x2eb   :  { %v1114_v36 = vsub.f32 %v2554_v4, %v1072_v54  ;;  %v1247_v23 = vsel %vm991_vm0, %v2696_v51, 0.0 }
 0x2ec   :  { %1248 = vadd.xlane.f32.xlu1 %v1247_v23 }
 0x2ed   :  { %v1172_v38 = vmul.f32 1.442695, %v1114_v36 }
 0x2ee   :  { %v1066_v27 = vpop.xlane.xlu0 %1065  ;;  %v1075_v63 = vpop.xlane.xlu1 %1074 }
 0x2ef   :  { %2140 = vpow2.f32 %v1172_v38  ;;  %v1112_v10 = vsub.f32 %v2558_v8, %v1066_v27  ;;  %v1115_v28 = vsub.f32 %v2560_v17, %v1075_v63 }
 0x2f1   :  { %v1168_v22 = vmul.f32 1.442695, %v1112_v10  ;;  %v1174_v30 = vmul.f32 1.442695, %v1115_v28 }
 0x2f2   :  { %v1060_v12 = vpop.xlane.xlu0 %1059  ;;  %v1069_v26 = vpop.xlane.xlu1 %1068 }
 0x2f3   :  { %2142 = vpow2.f32 %v1168_v22  ;;  %v1110_v5 = vsub.f32 %v2540_v37, %v1060_v12  ;;  %v1113_v4 = vsub.f32 %v2566_v58, %v1069_v26 }
 0x2f4   :  { %2144 = vpow2.f32 %v1174_v30 }
 0x2f5   :  { %v1164_v9 = vmul.f32 1.442695, %v1110_v5  ;;  %v1170_v45 = vmul.f32 1.442695, %v1113_v4 }
 0x2f6   :  { %v1063_v48 = vpop.xlane.xlu1 %1062  ;;  %v1078_v56 = vpop.xlane.xlu0 %1077 }
 0x2f7   :  { %2146 = vpow2.f32 %v1164_v9  ;;  %v1111_v40 = vsub.f32 %v2548_v41, %v1063_v48  ;;  %v1116_v8 = vsub.f32 %v2574_v62, %v1078_v56 }
 0x2f8   :  { %2148 = vpow2.f32 %v1170_v45 }
 0x2f9   :  { %v1166_v17 = vmul.f32 1.442695, %v1111_v40  ;;  %v1176_v53 = vmul.f32 1.442695, %v1116_v8 }
 0x2fa   :  { %v1084_v11 = vpop.xlane.xlu0 %1083  ;;  %v1081_v55 = vpop.xlane.xlu1 %1080 }
 0x2fb   :  { %2150 = vpow2.f32 %v1166_v17  ;;  %v1118_v37 = vsub.f32 %v2568_v31, %v1084_v11  ;;  %v1117_v58 = vsub.f32 %v2582_v25, %v1081_v55 }
 0x2fc   :  { %v2709_v15 = vpop.eup %2140  ;;  %2152 = vpow2.f32 %v1176_v53 }
 0x2fd   :  { %v1180_v34 = vmul.f32 1.442695, %v1118_v37  ;;  %v1178_v54 = vmul.f32 1.442695, %v1117_v58  ;;  %v1262_v41 = vsel %vm991_vm0, %v2709_v15, 0.0 }
 0x2fe   :  { %1263 = vadd.xlane.f32.xlu0 %v1262_v41  ;;  %v1087_v62 = vpop.xlane.xlu1 %1086 }
 0x2ff   :  { %2154 = vpow2.f32 %v1180_v34  ;;  %v1119_v36 = vsub.f32 %v2576_v7, %v1087_v62 }
 0x300   :  { %v2714_v23 = vpop.eup %2142  ;;  %2156 = vpow2.f32 %v1178_v54 }
 0x301   :  { %v2716_v38 = vpop.eup %2144  ;;  %v1182_v31 = vmul.f32 1.442695, %v1119_v36  ;;  %v1256_v25 = vsel %vm991_vm0, %v2714_v23, 0.0 }
 0x302   :  { %1257 = vadd.xlane.f32.xlu0 %v1256_v25  ;;  %v1265_v27 = vsel %vm991_vm0, %v2716_v38, 0.0 }
 0x303   :  { %2158 = vpow2.f32 %v1182_v31  ;;  %1266 = vadd.xlane.f32.xlu1 %v1265_v27 }
 0x304   :  { %v2722_v63 = vpop.eup %2146 }
 0x305   :  { %v2724_v10 = vpop.eup %2148  ;;  %v1250_v7 = vsel %vm991_vm0, %v2722_v63, 0.0 }
 0x306   :  { %1251 = vadd.xlane.f32.xlu0 %v1250_v7  ;;  %v1259_v28 = vsel %vm991_vm0, %v2724_v10, 0.0 }
 0x307   :  { %1260 = vadd.xlane.f32.xlu1 %v1259_v28 }
 0x308   :  { %v2730_v22 = vpop.eup %2150 }
 0x309   :  { %v2732_v30 = vpop.eup %2152  ;;  %v1253_v12 = vsel %vm991_vm0, %v2730_v22, 0.0 }
 0x30a   :  { %v1268_v26 = vsel %vm991_vm0, %v2732_v30, 0.0 }
 0x30b   :  { %1269 = vadd.xlane.f32.xlu0 %v1268_v26  ;;  %1254 = vadd.xlane.f32.xlu1 %v1253_v12 }
 0x30c   :  { %v2738_v5 = vpop.eup %2154 }
 0x30d   :  { %v2740_v4 = vpop.eup %2156  ;;  %v1274_v9 = vsel %vm991_vm0, %v2738_v5, 0.0 }
 0x30e   :  { %v1271_v45 = vsel %vm991_vm0, %v2740_v4, 0.0 }
 0x30f   :  { %1275 = vadd.xlane.f32.xlu0 %v1274_v9  ;;  %1272 = vadd.xlane.f32.xlu1 %v1271_v45 }
 0x310   :  { %v2746_v48 = vpop.eup %2158 }
 0x311   :  { %v1277_v56 = vsel %vm991_vm0, %v2746_v48, 0.0 }
 0x313   :  { %1278 = vadd.xlane.f32.xlu1 %v1277_v56 }
 0x327   :  { %v1192_v40 = vpop.xlane.xlu0 %1191 }
 0x32b   :  { %v1186_v8 = vpop.xlane.xlu0 %1185 }
 0x32c   :  { %v1195_v17 = vpop.xlane.xlu1 %1194 }
 0x32d   :  { %2160 = vrcp.f32 %v1195_v17 }
 0x32e   :  { %2162 = vrcp.f32 %v1186_v8 }
 0x32f   :  { %2164 = vrcp.f32 %v1192_v40 }
 0x330   :  { %v1189_v53 = vpop.xlane.xlu1 %1188 }
 0x331   :  { %2166 = vrcp.f32 %v1189_v53 }
 0x333   :  { %v1204_v11 = vpop.xlane.xlu0 %1203 }
 0x334   :  { %v1207_v55 = vpop.xlane.xlu1 %1206  ;;  %2168 = vrcp.f32 %v1204_v11 }
 0x335   :  { %2170 = vrcp.f32 %v1207_v55 }
 0x337   :  { %v1198_v37 = vpop.xlane.xlu0 %1197 }
 0x338   :  { %2172 = vrcp.f32 %v1198_v37  ;;  %v1201_v58 = vpop.xlane.xlu1 %1200 }
 0x339   :  { %2174 = vrcp.f32 %v1201_v58 }
 0x33a   :  { %v2161_v34 = vpop.eup %2160 }
 0x33b   :  { %v2163_v54 = vpop.eup %2162  ;;  %v1315_v36 = vmul.f32 %v2161_v34, %v2604_v20 }
 0x33c   :  { %v2165_v41 = vpop.eup %2164  ;;  %v1312_v31 = vmul.f32 %v2163_v54, %v2602_v61 }
 0x33d   :  { %v1314_v27 = vmul.f32 %v2165_v41, %v2598_v24 }
 0x33e   :  { %v2167_v62 = vpop.eup %2166 }
 0x33f   :  { %v1313_v25 = vmul.f32 %v2167_v62, %v2610_v35  ;;  %v1345_v12 = vpack.c.bf16 %v1315_v36, %v1314_v27 }
 0x341   :  { %v1344_v7 = vpack.c.bf16 %v1313_v25, %v1312_v31  ;;  %v2169_v28 = vpop.eup %2168  ;;  %v729_v31 = vpack.c.bf16 %v2460_v39, %v2453_v57 }
 0x342   :  { %v2171_v26 = vpop.eup %2170  ;;  %v1318_v20 = vmul.f32 %v2169_v28, %v2614_v42 }
 0x343   :  { %1982 = vmatprep.mubr.msk.bf16.mxu0 %vm991_vm0, %v1344_v7  ;;  %v1319_v24 = vmul.f32 %v2171_v26, %v2616_v14 }
 0x344   :  { %1983 = vmatmul.mubr.msk.bf16.vlgmr.msra.gmra.mxu0 %vm991_vm0, %v1345_v12 }
 0x345   :  { %v2173_v9 = vpop.eup %2172  ;;  %2007 = vmatpush3.bf16.msra.mxu0 %v2444_v13  ;;  %v1347_v8 = vpack.c.bf16 %v1319_v24, %v1318_v20 }
 0x346   :  { %v2175_v45 = vpop.eup %2174  ;;  %2008 = vmatprep.subr.bf16.mxu0 %v2416_v1  ;;  %v1316_v61 = vmul.f32 %v2173_v9, %v2623_v44 }
 0x347   :  { %v1216_v35 = vpop.xlane.xlu0 %1215  ;;  %v1317_v56 = vmul.f32 %v2175_v45, %v2625_v60 }
 0x349   :  { %2009 = vmatpush3.bf16.msra.mxu0 %v2416_v1  ;;  %v1346_v40 = vpack.c.bf16 %v1317_v56, %v1316_v61 }
 0x34a   :  { %2010 = vmatprep.subr.bf16.mxu0 %v2402_v49 }
 0x34b   :  { %1986 = vmatprep.mubr.msk.bf16.mxu0 %vm991_vm0, %v1346_v40  ;;  %v1210_v13 = vpop.xlane.xlu0 %1209 }
 0x34c   :  { %1987 = vmatmul.mubr.msk.bf16.gmra.mxu0 %vm991_vm0, %v1347_v8 }
 0x34d   :  { %2011 = vmatpush3.bf16.msra.mxu0 %v2402_v49  ;;  %v1219_v44 = vpop.xlane.xlu1 %1218 }
 0x34e   :  { %2012 = vmatprep.subr.bf16.mxu0 %v2406_v52  ;;  %2176 = vrcp.f32 %v1219_v44 }
 0x34f   :  { %v1228_v42 = vpop.xlane.xlu0 %1227  ;;  %2178 = vrcp.f32 %v1210_v13 }
 0x350   :  { %2180 = vrcp.f32 %v1216_v35 }
 0x351   :  { %2013 = vmatpush3.bf16.msra.mxu0 %v2406_v52  ;;  %v1213_v1 = vpop.xlane.xlu1 %1212 }
 0x352   :  { %2182 = vrcp.f32 %v1213_v1 }
 0x353   :  { %v1222_v14 = vpop.xlane.xlu0 %1221 }
 0x355   :  { %v1231_v60 = vpop.xlane.xlu1 %1230 }
 0x356   :  { %2184 = vrcp.f32 %v1231_v60 }
 0x357   :  { %2186 = vrcp.f32 %v1222_v14 }
 0x358   :  { %2188 = vrcp.f32 %v1228_v42 }
 0x359   :  { %v1225_v17 = vpop.xlane.xlu1 %1224 }
 0x35a   :  { %2190 = vrcp.f32 %v1225_v17 }
 0x35b   :  { %v2177_v53 = vpop.eup %2176 }
 0x35c   :  { %v2179_v49 = vpop.eup %2178  ;;  %v1323_v37 = vmul.f32 %v2177_v53, %v2646_v47 }
 0x35d   :  { %v2181_v11 = vpop.eup %2180  ;;  %v1320_v58 = vmul.f32 %v2179_v49, %v2642_v50 }
 0x35e   :  { %v1322_v52 = vmul.f32 %v2181_v11, %v2637_v0 }
 0x35f   :  { %v2183_v55 = vpop.eup %2182 }
 0x360   :  { %v1321_v34 = vmul.f32 %v2183_v55, %v2654_v3  ;;  %v1349_v41 = vpack.c.bf16 %v1323_v37, %v1322_v52 }
 0x362   :  { %v1348_v54 = vpack.c.bf16 %v1321_v34, %v1320_v58 }
 0x363   :  { %v2185_v62 = vpop.eup %2184 }
 0x364   :  { %1998 = vmatprep.mubr.msk.bf16.mxu1 %vm991_vm0, %v1348_v54  ;;  %v2187_v36 = vpop.eup %2186  ;;  %v1327_v3 = vmul.f32 %v2185_v62, %v2662_v19 }
 0x365   :  { %1999 = vmatmul.mubr.msk.bf16.vlgmr.msra.gmra.mxu1 %vm991_vm0, %v1349_v41  ;;  %v2189_v25 = vpop.eup %2188  ;;  %v1324_v0 = vmul.f32 %v2187_v36, %v2658_v2 }
 0x366   :  { %2023 = vmatpush3.bf16.msra.mxu1 %v2457_v33  ;;  %v1326_v7 = vmul.f32 %v2189_v25, %v2650_v59 }
 0x367   :  { %v2191_v47 = vpop.eup %2190  ;;  %2024 = vmatprep.subr.bf16.mxu1 %v729_v31  ;;  %v1240_v50 = vpop.xlane.xlu0 %1239 }
 0x368   :  { %v1325_v27 = vmul.f32 %v2191_v47, %v2667_v21  ;;  %v1351_v57 = vpack.c.bf16 %v1327_v3, %v1326_v7 }
 0x36a   :  { %2025 = vmatpush3.bf16.msra.mxu1 %v729_v31  ;;  %v1350_v28 = vpack.c.bf16 %v1325_v27, %v1324_v0 }
 0x36b   :  { %2026 = vmatprep.subr.bf16.mxu1 %v2418_v16  ;;  %v1234_v39 = vpop.xlane.xlu0 %1233 }
 0x36c   :  { %v1243_v12 = vpop.xlane.xlu1 %1242  ;;  %2002 = vmatprep.mubr.msk.bf16.mxu1 %vm991_vm0, %v1350_v28 }
 0x36d   :  { %2003 = vmatmul.mubr.msk.bf16.gmra.mxu1 %vm991_vm0, %v1351_v57  ;;  %2192 = vrcp.f32 %v1243_v12 }
 0x36e   :  { %2027 = vmatpush3.bf16.msra.mxu1 %v2418_v16  ;;  %2194 = vrcp.f32 %v1234_v39 }
 0x36f   :  { %2028 = vmatprep.subr.bf16.mxu1 %v2424_v29  ;;  %2196 = vrcp.f32 %v1240_v50 }
 0x370   :  { %v1237_v33 = vpop.xlane.xlu1 %1236 }
 0x371   :  { %2198 = vrcp.f32 %v1237_v33  ;;  %v1246_v59 = vpop.xlane.xlu0 %1245 }
 0x372   :  { %2029 = vmatpush3.bf16.msra.mxu1 %v2424_v29  ;;  %2200 = vrcp.f32 %v1246_v59 }
 0x375   :  { %v1249_v2 = vpop.xlane.xlu1 %1248 }
 0x376   :  { %2202 = vrcp.f32 %v1249_v2 }
 0x37a   :  { %v2193_v19 = vpop.eup %2192 }
 0x37b   :  { %v2195_v21 = vpop.eup %2194  ;;  %v1331_v45 = vmul.f32 %v2193_v19, %v2682_v18 }
 0x37c   :  { %v2197_v26 = vpop.eup %2196  ;;  %v1328_v16 = vmul.f32 %v2195_v21, %v2680_v32 }
 0x37d   :  { %v1330_v20 = vmul.f32 %v2197_v26, %v2676_v43 }
 0x37e   :  { %v2199_v9 = vpop.eup %2198 }
 0x37f   :  { %v1329_v61 = vmul.f32 %v2199_v9, %v2688_v46  ;;  %v2201_v24 = vpop.eup %2200  ;;  %v1353_v56 = vpack.c.bf16 %v1331_v45, %v1330_v20 }
 0x380   :  { %v1332_v29 = vmul.f32 %v2201_v24, %v2692_v6 }
 0x381   :  { %v1352_v35 = vpack.c.bf16 %v1329_v61, %v1328_v16 }
 0x383   :  { %v2203_v40 = vpop.eup %2202  ;;  %2014 = vmatprep.mubr.msk.bf16.mxu0 %vm991_vm0, %v1352_v35 }
 0x384   :  { %2015 = vmatmul.mubr.msk.bf16.vlgmr.msra.gmra.mxu0 %vm991_vm0, %v1353_v56  ;;  %v1333_v8 = vmul.f32 %v2203_v40, %v2696_v51 }
 0x386   :  { %v1354_v13 = vpack.c.bf16 %v1333_v8, %v1332_v29 }
 0x387   :  { %v1264_v18 = vpop.xlane.xlu0 %1263 }
 0x388   :  { %2018 = vmatprep.mubr.msk.bf16.mxu0 %vm991_vm0, %v1354_v13 }
 0x38b   :  { %v1258_v32 = vpop.xlane.xlu0 %1257 }
 0x38c   :  { %v1267_v46 = vpop.xlane.xlu1 %1266 }
 0x38d   :  { %2204 = vrcp.f32 %v1267_v46 }
 0x38e   :  { %2206 = vrcp.f32 %v1258_v32 }
 0x38f   :  { %v1252_v43 = vpop.xlane.xlu0 %1251  ;;  %2208 = vrcp.f32 %v1264_v18 }
 0x390   :  { %v1261_v44 = vpop.xlane.xlu1 %1260 }
 0x391   :  { %2210 = vrcp.f32 %v1261_v44 }
 0x392   :  { %2212 = vrcp.f32 %v1252_v43 }
 0x394   :  { %v1270_v42 = vpop.xlane.xlu0 %1269  ;;  %v1255_v1 = vpop.xlane.xlu1 %1254 }
 0x395   :  { %2214 = vrcp.f32 %v1255_v1 }
 0x396   :  { %2216 = vrcp.f32 %v1270_v42 }
 0x398   :  { %v1276_v6 = vpop.xlane.xlu0 %1275  ;;  %v1273_v14 = vpop.xlane.xlu1 %1272 }
 0x399   :  { %2218 = vrcp.f32 %v1273_v14 }
 0x39a   :  { %v2205_v51 = vpop.eup %2204  ;;  %2220 = vrcp.f32 %v1276_v6 }
 0x39b   :  { %v2207_v60 = vpop.eup %2206  ;;  %v1339_v11 = vmul.f32 %v2205_v51, %v2716_v38 }
 0x39c   :  { %v1279_v17 = vpop.xlane.xlu1 %1278  ;;  %v2209_v53 = vpop.eup %2208  ;;  %v1336_v55 = vmul.f32 %v2207_v60, %v2714_v23 }
 0x39d   :  { %2222 = vrcp.f32 %v1279_v17  ;;  %v1338_v58 = vmul.f32 %v2209_v53, %v2709_v15 }
 0x39e   :  { %v2211_v49 = vpop.eup %2210 }
 0x39f   :  { %v1337_v37 = vmul.f32 %v2211_v49, %v2724_v10  ;;  %v2213_v34 = vpop.eup %2212  ;;  %v1357_v54 = vpack.c.bf16 %v1339_v11, %v1338_v58 }
 0x3a0   :  { %v1334_v62 = vmul.f32 %v2213_v34, %v2722_v63 }
 0x3a1   :  { %v1356_v52 = vpack.c.bf16 %v1337_v37, %v1336_v55 }
 0x3a2   :  { %v2215_v41 = vpop.eup %2214 }
 0x3a3   :  { %2030 = vmatprep.mubr.msk.bf16.mxu1 %vm991_vm0, %v1356_v52  ;;  %v1335_v36 = vmul.f32 %v2215_v41, %v2730_v22  ;;  %v2217_v31 = vpop.eup %2216 }
 0x3a4   :  { %2031 = vmatmul.mubr.msk.bf16.vlgmr.msra.gmra.mxu1 %vm991_vm0, %v1357_v54  ;;  %v1340_v15 = vmul.f32 %v2217_v31, %v2732_v30 }
 0x3a5   :  { %v1355_v38 = vpack.c.bf16 %v1335_v36, %v1334_v62 }
 0x3a6   :  { %v2219_v25 = vpop.eup %2218 }
 0x3a7   :  { %v2221_v23 = vpop.eup %2220  ;;  %2019 = vmatmul.mubr.msk.bf16.gmra.mxu0 %vm991_vm0, %v1355_v38  ;;  %v1341_v10 = vmul.f32 %v2219_v25, %v2740_v4 }
 0x3a8   :  { %v1342_v3 = vmul.f32 %v2221_v23, %v2738_v5 }
 0x3a9   :  { %v1358_v50 = vpack.c.bf16 %v1341_v10, %v1340_v15 }
 0x3aa   :  { %v2223_v47 = vpop.eup %2222 }
 0x3ab   :  { %v1343_v0 = vmul.f32 %v2223_v47, %v2746_v48  ;;  %2034 = vmatprep.mubr.msk.bf16.mxu1 %vm991_vm0, %v1358_v50 }
 0x3ad   :  { %v1359_v63 = vpack.c.bf16 %v1343_v0, %v1342_v3 }
 0x3af   :  { %2035 = vmatmul.mubr.msk.bf16.gmra.mxu1 %vm991_vm0, %v1359_v63 }
 0x404   :  { %v1984_v22 = vpop.f32.mrf.mxu0 }
 0x405   :  { %1670 = vst [vmem:[#allocation7 + $0x10] sm:$0xff] %v1984_v22 }
 0x406   :  { %v1406_v27 = vpop.f32.mrf.mxu0 }
 0x407   :  { %1668 = vst [vmem:[#allocation7] sm:$0xff] %v1406_v27 }
 0x408   :  { %v1985_v7 = vpop.f32.mrf.mxu0 }
 0x409   :  { %1671 = vst [vmem:[#allocation7 + $0x18] sm:$0xff] %v1985_v7 }
 0x40a   :  { %v1409_v30 = vpop.f32.mrf.mxu0 }
 0x40b   :  { %1669 = vst [vmem:[#allocation7 + $0x8] sm:$0xff] %v1409_v30 }
 0x40c   :  { %v1988_v4 = vpop.f32.mrf.mxu0 }
 0x40d   :  { %1674 = vst [vmem:[#allocation7 + $0x30] sm:$0xff] %v1988_v4 }
 0x40e   :  { %v1422_v28 = vpop.f32.mrf.mxu0 }
 0x40f   :  { %1672 = vst [vmem:[#allocation7 + $0x20] sm:$0xff] %v1422_v28 }
 0x410   :  { %v1989_v5 = vpop.f32.mrf.mxu0 }
 0x411   :  { %1675 = vst [vmem:[#allocation7 + $0x38] sm:$0xff] %v1989_v5 }
 0x412   :  { %v1425_v48 = vpop.f32.mrf.mxu0 }
 0x413   :  { %1673 = vst [vmem:[#allocation7 + $0x28] sm:$0xff] %v1425_v48 }
 0x425   :  { %v2000_v57 = vpop.f32.mrf.mxu1 }
 0x426   :  { %1678 = vst [vmem:[#allocation7 + $0x50] sm:$0xff] %v2000_v57 }
 0x427   :  { %v1483_v39 = vpop.f32.mrf.mxu1 }
 0x428   :  { %1676 = vst [vmem:[#allocation7 + $0x40] sm:$0xff] %v1483_v39 }
 0x429   :  { %v2001_v12 = vpop.f32.mrf.mxu1 }
 0x42a   :  { %1679 = vst [vmem:[#allocation7 + $0x58] sm:$0xff] %v2001_v12 }
 0x42b   :  { %v1486_v33 = vpop.f32.mrf.mxu1 }
 0x42c   :  { %1677 = vst [vmem:[#allocation7 + $0x48] sm:$0xff] %v1486_v33 }
 0x42d   :  { %v2004_v59 = vpop.f32.mrf.mxu1 }
 0x42e   :  { %1682 = vst [vmem:[#allocation7 + $0x70] sm:$0xff] %v2004_v59 }
 0x42f   :  { %v1499_v2 = vpop.f32.mrf.mxu1 }
 0x430   :  { %1680 = vst [vmem:[#allocation7 + $0x60] sm:$0xff] %v1499_v2 }
 0x431   :  { %v2005_v19 = vpop.f32.mrf.mxu1 }
 0x432   :  { %1683 = vst [vmem:[#allocation7 + $0x78] sm:$0xff] %v2005_v19 }
 0x433   :  { %v1502_v21 = vpop.f32.mrf.mxu1 }
 0x434   :  { %1681 = vst [vmem:[#allocation7 + $0x68] sm:$0xff] %v1502_v21 }
 0x444   :  { %v2016_v26 = vpop.f32.mrf.mxu0 }
 0x445   :  { %1686 = vst [vmem:[#allocation7 + $0x90] sm:$0xff] %v2016_v26 }
 0x446   :  { %v1560_v9 = vpop.f32.mrf.mxu0 }
 0x447   :  { %1684 = vst [vmem:[#allocation7 + $0x80] sm:$0xff] %v1560_v9 }
 0x448   :  { %v2017_v45 = vpop.f32.mrf.mxu0 }
 0x449   :  { %1687 = vst [vmem:[#allocation7 + $0x98] sm:$0xff] %v2017_v45 }
 0x44a   :  { %v1563_v16 = vpop.f32.mrf.mxu0 }
 0x44b   :  { %1685 = vst [vmem:[#allocation7 + $0x88] sm:$0xff] %v1563_v16 }
 0x464   :  { %v2032_v61 = vpop.f32.mrf.mxu1 }
 0x465   :  { %1694 = vst [vmem:[#allocation7 + $0xd0] sm:$0xff] %v2032_v61 }
 0x466   :  { %v1637_v20 = vpop.f32.mrf.mxu1 }
 0x467   :  { %1692 = vst [vmem:[#allocation7 + $0xc0] sm:$0xff] %v1637_v20  ;;  %v2020_v24 = vpop.f32.mrf.mxu0 }
 0x468   :  { %v2033_v35 = vpop.f32.mrf.mxu1  ;;  %1690 = vst [vmem:[#allocation7 + $0xb0] sm:$0xff] %v2020_v24 }
 0x469   :  { %1695 = vst [vmem:[#allocation7 + $0xd8] sm:$0xff] %v2033_v35  ;;  %v1576_v56 = vpop.f32.mrf.mxu0 }
 0x46a   :  { %v1640_v40 = vpop.f32.mrf.mxu1  ;;  %1688 = vst [vmem:[#allocation7 + $0xa0] sm:$0xff] %v1576_v56 }
 0x46b   :  { %1693 = vst [vmem:[#allocation7 + $0xc8] sm:$0xff] %v1640_v40  ;;  %v2021_v29 = vpop.f32.mrf.mxu0 }
 0x46c   :  { %1691 = vst [vmem:[#allocation7 + $0xb8] sm:$0xff] %v2021_v29 }
 0x46d   :  { %v1579_v8 = vpop.f32.mrf.mxu0 }
 0x46e   :  { %1689 = vst [vmem:[#allocation7 + $0xa8] sm:$0xff] %v1579_v8 }
 0x46f   :  { %v2036_v13 = vpop.f32.mrf.mxu1 }
 0x470   :  { %1698 = vst [vmem:[#allocation7 + $0xf0] sm:$0xff] %v2036_v13 }
 0x471   :  { %v1653_v18 = vpop.f32.mrf.mxu1 }
 0x472   :  { %1696 = vst [vmem:[#allocation7 + $0xe0] sm:$0xff] %v1653_v18 }
 0x473   :  { %v2037_v32 = vpop.f32.mrf.mxu1 }
 0x474   :  { %1699 = vst [vmem:[#allocation7 + $0xf8] sm:$0xff] %v2037_v32 }
 0x475   :  { %v1656_v46 = vpop.f32.mrf.mxu1 }
 0x476   :  { %1697 = vst [vmem:[#allocation7 + $0xe8] sm:$0xff] %v1656_v46 }
 0x477   :  { %2275 = shalt.err (!%p2272_p0)
}
 0x478   :  { %s2298_s24 = smov 128   ;;  %s2299_s25 = smov 8  }
 0x479   :  { %1711 = dma.vmem_to_hbm [thread:$0]  %s1706_s1, 4096, %s2817_s2, [#allocation4], %s2298_s24, %s2298_s24, %s2299_s25  }
 0x47a   :  { %2288 = dma.done.wait [#allocation4], 4096  }
 0x47b   :  { %2289 = vsyncadd [#allocation4], 4294963200 }
 0x47c   :  { %1715 = vsyncpa [#allocation3], 1 }
 0x47d   :  { %1716 = vsyncpa [#allocation6], 1 }
 0x47e   :  { %1717 = vsyncpa [#allocation4], 1 }

</bundles_post_ra>
